<compile_context>
chip_gen: v7x
topology: tpu7x:2x2x1
jax: 0.10.0
libtpu: 0.0.40
codegen_flags: <defaults>
</compile_context>

<pallas_src>
import functools
import math

import jax
import jax.numpy as jnp
from jax import lax
from jax.experimental import pallas as pl
from jax.experimental.pallas import tpu as pltpu

BN_EPS = 1e-5  # nn.BatchNorm2d default


def _silu(x):
    return x * jax.nn.sigmoid(x)


# --------------------------- Pallas kernel ---------------------------------

def _repncsp_kernel(x_ref, mask_ref,
                    cv1_w_ref, cv1_b_ref, cv2_w_ref, cv2_b_ref,
                    rep_w_ref, rep_b_ref, mcv_w_ref, mcv_b_ref,
                    cv3_wz_ref, cv3_wy_ref, cv3_b_ref,
                    o_ref, *, img_w, hw, pad_w, n_blocks, add_residual):
    f32 = jnp.float32
    bf16 = jnp.bfloat16

    x = x_ref[0]                                  # (c1, HW) bf16
    em = mask_ref[...]                            # (2, HW)  bf16
    not_left = em[0:1, :]                         # 0.0 where w == 0
    not_right = em[1:2, :]                        # 0.0 where w == W-1

    def conv1x1(a_bf16, w_ref, b_ref):
        # (cout, cin) @ (cin, HW) on the MXU, f32 accumulate + bias.
        return jnp.dot(w_ref[...], a_bf16, preferred_element_type=f32) + b_ref[...]

    def conv3x3(a_f32, w9, b):
        # a_f32: (cin, HW) f32, w9: (9, cout, cin) bf16, b: (cout, 1) f32.
        # 'same' 3x3 conv as 9 accumulating matmuls over flat-shifted views:
        # output pixel m=(h,w) reads input flat index m + (dy-1)*W + (dx-1);
        # the zero pad handles vertical borders, the edge masks the horizontal
        # ones (vertical-invalid positions are always flat-out-of-range or
        # horizontally invalid, so this covers all padding cases).
        a = a_f32.astype(bf16)
        cin = a.shape[0]
        zpad = jnp.zeros((cin, pad_w), bf16)
        ap = jnp.concatenate([zpad, a, zpad], axis=1)      # (cin, 2*pad_w + HW)
        acc = jnp.zeros((w9.shape[1], hw), f32) + b
        for dy in range(3):
            for dx in range(3):
                d = (dy - 1) * img_w + (dx - 1)
                xs = ap[:, pad_w + d: pad_w + d + hw]      # shifted, zero-filled
                if dx == 0:
                    xs = xs * not_left
                elif dx == 2:
                    xs = xs * not_right
                acc = acc + jnp.dot(w9[3 * dy + dx], xs,
                                    preferred_element_type=f32)
        return acc

    # cv1 / cv2 (1x1 conv + folded BN + SiLU), fused into the same kernel.
    y1 = _silu(conv1x1(x, cv1_w_ref, cv1_b_ref))           # (c_, HW) f32
    y2 = _silu(conv1x1(x, cv2_w_ref, cv2_b_ref))           # (c_, HW) f32

    z = y1
    for i in range(n_blocks):
        # RepConvN: SiLU(conv3x3_bn(x) + conv1x1_bn(x)); the 1x1 branch is
        # already folded into the centre tap of rep_w (bn identity branch is None).
        t = _silu(conv3x3(z, rep_w_ref[i], rep_b_ref[i]))
        # Conv(c_, c_, 3) + BN + SiLU, then residual (shortcut=True, cin==cout).
        u = _silu(conv3x3(t, mcv_w_ref[i], mcv_b_ref[i]))
        z = z + u if add_residual else u

    # cv3 on torch.cat((z, y2), dim=1) == split-weight matmul (no concat).
    out = _silu(jnp.dot(cv3_wz_ref[...], z.astype(bf16), preferred_element_type=f32)
                + jnp.dot(cv3_wy_ref[...], y2.astype(bf16), preferred_element_type=f32)
                + cv3_b_ref[...])
    o_ref[0] = out.astype(o_ref.dtype)


# --------------------------- parameter handling -----------------------------

def _conv_bn_folded(key, cin, cout, k):
    """Conv2d(cin, cout, k, bias=False) + BatchNorm2d(cout) folded for inference.

    Returns (OIHW weight, per-channel bias), both float32.
    """
    kw, kg, kb, km, kv = jax.random.split(key, 5)
    w = jax.random.normal(kw, (cout, cin, k, k), jnp.float32) / math.sqrt(cin * k * k)
    gamma = 1.0 + 0.1 * jax.random.normal(kg, (cout,), jnp.float32)
    beta = 0.1 * jax.random.normal(kb, (cout,), jnp.float32)
    mean = 0.1 * jax.random.normal(km, (cout,), jnp.float32)
    var = jax.random.uniform(kv, (cout,), jnp.float32, minval=0.5, maxval=1.5)
    scale = gamma / jnp.sqrt(var + BN_EPS)
    return w * scale[:, None, None, None], beta - mean * scale


def make_repncsp_params(key, c1, c2, n=1, e=0.5):
    c_ = int(c2 * e)
    keys = jax.random.split(key, 3 + 3 * n)
    params = {
        "cv1": _conv_bn_folded(keys[0], c1, c_, 1),
        "cv2": _conv_bn_folded(keys[1], c1, c_, 1),
        "cv3": _conv_bn_folded(keys[2], 2 * c_, c2, 1),
        "m": [],
    }
    for i in range(n):
        # RepNBottleneck(c_, c_, e=1.0):
        #   cv1 = RepConvN(c_, c_) -> 3x3 branch + 1x1 branch (bn branch None)
        #   cv2 = Conv(c_, c_, 3),  add = shortcut and c_in == c_out
        params["m"].append({
            "rep3": _conv_bn_folded(keys[3 + 3 * i], c_, c_, 3),
            "rep1": _conv_bn_folded(keys[4 + 3 * i], c_, c_, 1),
            "cv2": _conv_bn_folded(keys[5 + 3 * i], c_, c_, 3),
        })
    return params


def _pack_kernel_params(params):
    """Repack folded-BN params into the kernel layout (bf16 weights, f32 bias)."""
    bf16, f32 = jnp.bfloat16, jnp.float32

    def pack1x1(wb):
        w, b = wb                                   # w: (co, ci, 1, 1)
        return w[:, :, 0, 0].astype(bf16), b[:, None].astype(f32)

    def pack3x3(wb):
        w, b = wb                                   # w: (co, ci, 3, 3)
        w9 = jnp.transpose(w, (2, 3, 0, 1)).reshape(9, w.shape[0], w.shape[1])
        return w9, b                                # (9, co, ci), tap = 3*ky + kx

    cv1_w, cv1_b = pack1x1(params["cv1"])
    cv2_w, cv2_b = pack1x1(params["cv2"])

    w3, b3 = params["cv3"]                          # (c2, 2*c_, 1, 1)
    c_ = cv1_w.shape[0]
    cv3_wz = w3[:, :c_, 0, 0].astype(bf16)          # acts on the bottleneck branch
    cv3_wy = w3[:, c_:, 0, 0].astype(bf16)          # acts on the cv2 (y2) branch
    cv3_b = b3[:, None].astype(f32)

    rep_w, rep_b, mcv_w, mcv_b = [], [], [], []
    for blk in params["m"]:
        w9, b9 = pack3x3(blk["rep3"])
        w1, b1 = blk["rep1"]
        w9 = w9.at[4].add(w1[:, :, 0, 0])           # fold 1x1 branch into centre tap
        rep_w.append(w9)
        rep_b.append((b9 + b1)[:, None])
        mw9, mb9 = pack3x3(blk["cv2"])
        mcv_w.append(mw9)
        mcv_b.append(mb9[:, None])

    return dict(
        cv1_w=cv1_w, cv1_b=cv1_b, cv2_w=cv2_w, cv2_b=cv2_b,
        rep_w=jnp.stack(rep_w).astype(bf16), rep_b=jnp.stack(rep_b).astype(f32),
        mcv_w=jnp.stack(mcv_w).astype(bf16), mcv_b=jnp.stack(mcv_b).astype(f32),
        cv3_wz=cv3_wz, cv3_wy=cv3_wy, cv3_b=cv3_b)


# --------------------------- forward (Pallas) -------------------------------

def _replicated_spec(a):
    nd = a.ndim

    def index_map(n):
        return (0,) * nd

    return pl.BlockSpec(a.shape, index_map)


def repncsp_forward(x_nchw, params, *, shortcut=True):
    """RepNCSP forward. x_nchw: (N, c1, H, W) float32 (PyTorch layout)."""
    N, c1, H, W = x_nchw.shape
    hw = H * W
    kp = _pack_kernel_params(params)
    c_ = kp["cv1_w"].shape[0]
    c2 = kp["cv3_b"].shape[0]
    n_blocks = kp["rep_w"].shape[0]
    pad_w = pl.cdiv(W + 1, 128) * 128               # lane-aligned zero pad >= W+1

    # NCHW -> (N, C, H*W) is a free reshape; cast matmul operand to bf16.
    x = x_nchw.reshape(N, c1, hw).astype(jnp.bfloat16)

    # Horizontal border masks for the 3x3 taps (computed once, tiny input).
    w_idx = jnp.arange(hw, dtype=jnp.int32) % W
    edge_mask = jnp.stack([(w_idx != 0), (w_idx != W - 1)]).astype(jnp.bfloat16)

    weights = [kp["cv1_w"], kp["cv1_b"], kp["cv2_w"], kp["cv2_b"],
               kp["rep_w"], kp["rep_b"], kp["mcv_w"], kp["mcv_b"],
               kp["cv3_wz"], kp["cv3_wy"], kp["cv3_b"]]

    in_specs = ([pl.BlockSpec((1, c1, hw), lambda n: (n, 0, 0)),
                 _replicated_spec(edge_mask)]
                + [_replicated_spec(w) for w in weights])

    flops = 2 * N * hw * (2 * c_ * c1 + n_blocks * 2 * 9 * c_ * c_ + 2 * c_ * c2)
    transcendentals = N * hw * (2 * c_ + n_blocks * 2 * c_ + c2)
    bytes_accessed = (int(x.size) * 2 + N * c2 * hw * 4
                      + sum(int(w.size) * w.dtype.itemsize for w in weights))

    kernel = functools.partial(
        _repncsp_kernel, img_w=W, hw=hw, pad_w=pad_w, n_blocks=n_blocks,
        add_residual=shortcut)  # cin == cout is guaranteed (e=1.0 in the blocks)

    out = pl.pallas_call(
        kernel,
        out_shape=jax.ShapeDtypeStruct((N, c2, hw), jnp.float32),
        grid=(N,),
        in_specs=in_specs,
        out_specs=pl.BlockSpec((1, c2, hw), lambda n: (n, 0, 0)),
        compiler_params=pltpu.CompilerParams(
            dimension_semantics=("parallel",),
            vmem_limit_bytes=64 * 1024 * 1024),
        cost_estimate=pl.CostEstimate(flops=flops,
                                      transcendentals=transcendentals,
                                      bytes_accessed=bytes_accessed),
    )(x, edge_mask, *weights)
    return out.reshape(N, c2, H, W)


# --------------------------- pure-JAX reference -----------------------------

def _ref_conv(x, w, b, act):
    k = w.shape[2]
    y = lax.conv_general_dilated(
        x, w, window_strides=(1, 1), padding=[(k // 2, k // 2)] * 2,
        dimension_numbers=("NCHW", "OIHW", "NCHW"))
    y = y + b.reshape(1, -1, 1, 1)
    return _silu(y) if act else y


def ref_repncsp(x, params, *, shortcut=True):
    y1 = _ref_conv(x, *params["cv1"], True)
    y2 = _ref_conv(x, *params["cv2"], True)
    z = y1
    for blk in params["m"]:
        t = _silu(_ref_conv(z, *blk["rep3"], False) + _ref_conv(z, *blk["rep1"], False))
        u = _ref_conv(t, *blk["cv2"], True)
        z = z + u if shortcut else u
    return _ref_conv(jnp.concatenate([z, y2], axis=1), *params["cv3"], True)


# --------------------------- demo / self-check ------------------------------

if __name__ == "__main__":
    key = jax.random.PRNGKey(0)
    kx, kp = jax.random.split(key)

    c1 = c2 = 8
    N, H, W = 2, 16, 16
    x = jax.random.normal(kx, (N, c1, H, W), jnp.float32)
    params = make_repncsp_params(kp, c1, c2, n=1, e=0.5)

    out = jax.jit(repncsp_forward)(x, params)
    jax.block_until_ready(out)

    ref = ref_repncsp(x, params)
    assert out.shape == (N, c2, H, W), out.shape
    # bf16 matmul operands (f32 accumulate) vs a pure-f32 reference.
    assert jnp.allclose(out, ref, rtol=5e-2, atol=5e-2), (
        "Pallas output mismatch vs reference: max abs err = "
        f"{float(jnp.max(jnp.abs(out - ref)))}")

    print("KERNEL_OK")
</pallas_src>

<mosaic_0001>
module attributes {stable_mosaic.version = 11 : i64} {
  func.func @_repncsp_kernel(%arg0: i32, %arg1: memref<1x8x256xbf16, #tpu.memory_space<vmem>>, %arg2: memref<2x256xbf16, #tpu.memory_space<vmem>>, %arg3: memref<4x8xbf16, #tpu.memory_space<vmem>>, %arg4: memref<4x1xf32, #tpu.memory_space<vmem>>, %arg5: memref<4x8xbf16, #tpu.memory_space<vmem>>, %arg6: memref<4x1xf32, #tpu.memory_space<vmem>>, %arg7: memref<1x9x4x4xbf16, #tpu.memory_space<vmem>>, %arg8: memref<1x4x1xf32, #tpu.memory_space<vmem>>, %arg9: memref<1x9x4x4xbf16, #tpu.memory_space<vmem>>, %arg10: memref<1x4x1xf32, #tpu.memory_space<vmem>>, %arg11: memref<8x4xbf16, #tpu.memory_space<vmem>>, %arg12: memref<8x4xbf16, #tpu.memory_space<vmem>>, %arg13: memref<8x1xf32, #tpu.memory_space<vmem>>, %arg14: memref<1x8x256xf32, #tpu.memory_space<vmem>>) attributes {dimension_semantics = [#tpu.dimension_semantics<parallel>], iteration_bounds = array<i64: 2>, scalar_prefetch = 0 : i64, scratch_operands = 0 : i64, tpu.core_type = #tpu.core_type<tc>, window_params = [{transform_indices = @transform_0, window_bounds = array<i64: 1, 8, 256>}, {pipeline_mode = #tpu.pipeline_mode<synchronous>, transform_indices = @transform_1, window_bounds = array<i64: 2, 256>}, {pipeline_mode = #tpu.pipeline_mode<synchronous>, transform_indices = @transform_2, window_bounds = array<i64: 4, 8>}, {pipeline_mode = #tpu.pipeline_mode<synchronous>, transform_indices = @transform_3, window_bounds = array<i64: 4, 1>}, {pipeline_mode = #tpu.pipeline_mode<synchronous>, transform_indices = @transform_4, window_bounds = array<i64: 4, 8>}, {pipeline_mode = #tpu.pipeline_mode<synchronous>, transform_indices = @transform_5, window_bounds = array<i64: 4, 1>}, {pipeline_mode = #tpu.pipeline_mode<synchronous>, transform_indices = @transform_6, window_bounds = array<i64: 1, 9, 4, 4>}, {pipeline_mode = #tpu.pipeline_mode<synchronous>, transform_indices = @transform_7, window_bounds = array<i64: 1, 4, 1>}, {pipeline_mode = #tpu.pipeline_mode<synchronous>, transform_indices = @transform_8, window_bounds = array<i64: 1, 9, 4, 4>}, {pipeline_mode = #tpu.pipeline_mode<synchronous>, transform_indices = @transform_9, window_bounds = array<i64: 1, 4, 1>}, {pipeline_mode = #tpu.pipeline_mode<synchronous>, transform_indices = @transform_10, window_bounds = array<i64: 8, 4>}, {pipeline_mode = #tpu.pipeline_mode<synchronous>, transform_indices = @transform_11, window_bounds = array<i64: 8, 4>}, {pipeline_mode = #tpu.pipeline_mode<synchronous>, transform_indices = @transform_12, window_bounds = array<i64: 8, 1>}, {transform_indices = @transform_13, window_bounds = array<i64: 1, 8, 256>}]} {
    %c0 = arith.constant 0 : index
    %c0_0 = arith.constant 0 : index
    %c0_1 = arith.constant 0 : index
    %0 = vector.load %arg1[%c0, %c0_0, %c0_1] : memref<1x8x256xbf16, #tpu.memory_space<vmem>>, vector<1x8x256xbf16>
    %1 = vector.shape_cast %0 : vector<1x8x256xbf16> to vector<8x256xbf16>
    %c0_2 = arith.constant 0 : index
    %c0_3 = arith.constant 0 : index
    %2 = vector.load %arg2[%c0_2, %c0_3] : memref<2x256xbf16, #tpu.memory_space<vmem>>, vector<2x256xbf16>
    %3 = vector.extract_strided_slice %2 {offsets = [0, 0], sizes = [1, 256], strides = [1, 1]} : vector<2x256xbf16> to vector<1x256xbf16>
    %4 = vector.extract_strided_slice %2 {offsets = [1, 0], sizes = [1, 256], strides = [1, 1]} : vector<2x256xbf16> to vector<1x256xbf16>
    %c0_4 = arith.constant 0 : index
    %c0_5 = arith.constant 0 : index
    %5 = vector.load %arg3[%c0_4, %c0_5] : memref<4x8xbf16, #tpu.memory_space<vmem>>, vector<4x8xbf16>
    %cst = arith.constant dense<0.000000e+00> : vector<4x256xf32>
    %6 = tpu.matmul %5, %1, %cst {dimension_numbers = #tpu.dot_dimension_numbers<[1], [0], [0], [1], [0, 0, 1, 1], [], []>} : vector<4x8xbf16>, vector<8x256xbf16>, vector<4x256xf32> -> vector<4x256xf32>
    %c0_6 = arith.constant 0 : index
    %c0_7 = arith.constant 0 : index
    %7 = vector.load %arg4[%c0_6, %c0_7] : memref<4x1xf32, #tpu.memory_space<vmem>>, vector<4x1xf32>
    %8 = vector.broadcast %7 : vector<4x1xf32> to vector<4x256xf32>
    %9 = arith.addf %6, %8 : vector<4x256xf32>
    %10 = arith.negf %9 : vector<4x256xf32>
    %11 = math.exp %10 : vector<4x256xf32>
    %cst_8 = arith.constant 1.000000e+00 : f32
    %12 = vector.broadcast %cst_8 : f32 to vector<4x256xf32>
    %13 = arith.addf %12, %11 : vector<4x256xf32>
    %14 = arith.divf %12, %13 : vector<4x256xf32>
    %15 = arith.mulf %9, %14 : vector<4x256xf32>
    %c0_9 = arith.constant 0 : index
    %c0_10 = arith.constant 0 : index
    %16 = vector.load %arg5[%c0_9, %c0_10] : memref<4x8xbf16, #tpu.memory_space<vmem>>, vector<4x8xbf16>
    %cst_11 = arith.constant dense<0.000000e+00> : vector<4x256xf32>
    %17 = tpu.matmul %16, %1, %cst_11 {dimension_numbers = #tpu.dot_dimension_numbers<[1], [0], [0], [1], [0, 0, 1, 1], [], []>} : vector<4x8xbf16>, vector<8x256xbf16>, vector<4x256xf32> -> vector<4x256xf32>
    %c0_12 = arith.constant 0 : index
    %c0_13 = arith.constant 0 : index
    %18 = vector.load %arg6[%c0_12, %c0_13] : memref<4x1xf32, #tpu.memory_space<vmem>>, vector<4x1xf32>
    %19 = vector.broadcast %18 : vector<4x1xf32> to vector<4x256xf32>
    %20 = arith.addf %17, %19 : vector<4x256xf32>
    %21 = arith.negf %20 : vector<4x256xf32>
    %22 = math.exp %21 : vector<4x256xf32>
    %cst_14 = arith.constant 1.000000e+00 : f32
    %23 = vector.broadcast %cst_14 : f32 to vector<4x256xf32>
    %24 = arith.addf %23, %22 : vector<4x256xf32>
    %25 = arith.divf %23, %24 : vector<4x256xf32>
    %26 = arith.mulf %20, %25 : vector<4x256xf32>
    %c0_15 = arith.constant 0 : index
    %c0_16 = arith.constant 0 : index
    %c0_17 = arith.constant 0 : index
    %c0_18 = arith.constant 0 : index
    %27 = vector.load %arg7[%c0_15, %c0_16, %c0_17, %c0_18] : memref<1x9x4x4xbf16, #tpu.memory_space<vmem>>, vector<1x9x4x4xbf16>
    %28 = vector.shape_cast %27 : vector<1x9x4x4xbf16> to vector<9x4x4xbf16>
    %c0_19 = arith.constant 0 : index
    %c0_20 = arith.constant 0 : index
    %c0_21 = arith.constant 0 : index
    %29 = vector.load %arg8[%c0_19, %c0_20, %c0_21] : memref<1x4x1xf32, #tpu.memory_space<vmem>>, vector<1x4x1xf32>
    %30 = vector.shape_cast %29 : vector<1x4x1xf32> to vector<4x1xf32>
    %31 = arith.truncf %15 : vector<4x256xf32> to vector<4x256xbf16>
    %cst_22 = arith.constant 0.000000e+00 : bf16
    %32 = vector.broadcast %cst_22 : bf16 to vector<4x128xbf16>
    %33 = tpu.concatenate %32, %31, %32 in 1 : vector<4x128xbf16>, vector<4x256xbf16>, vector<4x128xbf16> -> vector<4x512xbf16>
    %cst_23 = arith.constant 0.000000e+00 : f32
    %34 = vector.broadcast %cst_23 : f32 to vector<4x256xf32>
    %35 = vector.broadcast %30 : vector<4x1xf32> to vector<4x256xf32>
    %36 = arith.addf %34, %35 : vector<4x256xf32>
    %37 = vector.extract_strided_slice %33 {offsets = [0, 111], sizes = [4, 256], strides = [1, 1]} : vector<4x512xbf16> to vector<4x256xbf16>
    %38 = vector.broadcast %3 : vector<1x256xbf16> to vector<4x256xbf16>
    %39 = arith.mulf %37, %38 : vector<4x256xbf16>
    %40 = vector.extract_strided_slice %28 {offsets = [0, 0, 0], sizes = [1, 4, 4], strides = [1, 1, 1]} : vector<9x4x4xbf16> to vector<1x4x4xbf16>
    %41 = vector.shape_cast %40 : vector<1x4x4xbf16> to vector<4x4xbf16>
    %cst_24 = arith.constant dense<0.000000e+00> : vector<4x256xf32>
    %42 = tpu.matmul %41, %39, %cst_24 {dimension_numbers = #tpu.dot_dimension_numbers<[1], [0], [0], [1], [0, 0, 1, 1], [], []>} : vector<4x4xbf16>, vector<4x256xbf16>, vector<4x256xf32> -> vector<4x256xf32>
    %43 = arith.addf %36, %42 : vector<4x256xf32>
    %44 = vector.extract_strided_slice %33 {offsets = [0, 112], sizes = [4, 256], strides = [1, 1]} : vector<4x512xbf16> to vector<4x256xbf16>
    %45 = vector.extract_strided_slice %28 {offsets = [1, 0, 0], sizes = [1, 4, 4], strides = [1, 1, 1]} : vector<9x4x4xbf16> to vector<1x4x4xbf16>
    %46 = vector.shape_cast %45 : vector<1x4x4xbf16> to vector<4x4xbf16>
    %cst_25 = arith.constant dense<0.000000e+00> : vector<4x256xf32>
    %47 = tpu.matmul %46, %44, %cst_25 {dimension_numbers = #tpu.dot_dimension_numbers<[1], [0], [0], [1], [0, 0, 1, 1], [], []>} : vector<4x4xbf16>, vector<4x256xbf16>, vector<4x256xf32> -> vector<4x256xf32>
    %48 = arith.addf %43, %47 : vector<4x256xf32>
    %49 = vector.extract_strided_slice %33 {offsets = [0, 113], sizes = [4, 256], strides = [1, 1]} : vector<4x512xbf16> to vector<4x256xbf16>
    %50 = vector.broadcast %4 : vector<1x256xbf16> to vector<4x256xbf16>
    %51 = arith.mulf %49, %50 : vector<4x256xbf16>
    %52 = vector.extract_strided_slice %28 {offsets = [2, 0, 0], sizes = [1, 4, 4], strides = [1, 1, 1]} : vector<9x4x4xbf16> to vector<1x4x4xbf16>
    %53 = vector.shape_cast %52 : vector<1x4x4xbf16> to vector<4x4xbf16>
    %cst_26 = arith.constant dense<0.000000e+00> : vector<4x256xf32>
    %54 = tpu.matmul %53, %51, %cst_26 {dimension_numbers = #tpu.dot_dimension_numbers<[1], [0], [0], [1], [0, 0, 1, 1], [], []>} : vector<4x4xbf16>, vector<4x256xbf16>, vector<4x256xf32> -> vector<4x256xf32>
    %55 = arith.addf %48, %54 : vector<4x256xf32>
    %56 = vector.extract_strided_slice %33 {offsets = [0, 127], sizes = [4, 256], strides = [1, 1]} : vector<4x512xbf16> to vector<4x256xbf16>
    %57 = vector.broadcast %3 : vector<1x256xbf16> to vector<4x256xbf16>
    %58 = arith.mulf %56, %57 : vector<4x256xbf16>
    %59 = vector.extract_strided_slice %28 {offsets = [3, 0, 0], sizes = [1, 4, 4], strides = [1, 1, 1]} : vector<9x4x4xbf16> to vector<1x4x4xbf16>
    %60 = vector.shape_cast %59 : vector<1x4x4xbf16> to vector<4x4xbf16>
    %cst_27 = arith.constant dense<0.000000e+00> : vector<4x256xf32>
    %61 = tpu.matmul %60, %58, %cst_27 {dimension_numbers = #tpu.dot_dimension_numbers<[1], [0], [0], [1], [0, 0, 1, 1], [], []>} : vector<4x4xbf16>, vector<4x256xbf16>, vector<4x256xf32> -> vector<4x256xf32>
    %62 = arith.addf %55, %61 : vector<4x256xf32>
    %63 = vector.extract_strided_slice %33 {offsets = [0, 128], sizes = [4, 256], strides = [1, 1]} : vector<4x512xbf16> to vector<4x256xbf16>
    %64 = vector.extract_strided_slice %28 {offsets = [4, 0, 0], sizes = [1, 4, 4], strides = [1, 1, 1]} : vector<9x4x4xbf16> to vector<1x4x4xbf16>
    %65 = vector.shape_cast %64 : vector<1x4x4xbf16> to vector<4x4xbf16>
    %cst_28 = arith.constant dense<0.000000e+00> : vector<4x256xf32>
    %66 = tpu.matmul %65, %63, %cst_28 {dimension_numbers = #tpu.dot_dimension_numbers<[1], [0], [0], [1], [0, 0, 1, 1], [], []>} : vector<4x4xbf16>, vector<4x256xbf16>, vector<4x256xf32> -> vector<4x256xf32>
    %67 = arith.addf %62, %66 : vector<4x256xf32>
    %68 = vector.extract_strided_slice %33 {offsets = [0, 129], sizes = [4, 256], strides = [1, 1]} : vector<4x512xbf16> to vector<4x256xbf16>
    %69 = vector.broadcast %4 : vector<1x256xbf16> to vector<4x256xbf16>
    %70 = arith.mulf %68, %69 : vector<4x256xbf16>
    %71 = vector.extract_strided_slice %28 {offsets = [5, 0, 0], sizes = [1, 4, 4], strides = [1, 1, 1]} : vector<9x4x4xbf16> to vector<1x4x4xbf16>
    %72 = vector.shape_cast %71 : vector<1x4x4xbf16> to vector<4x4xbf16>
    %cst_29 = arith.constant dense<0.000000e+00> : vector<4x256xf32>
    %73 = tpu.matmul %72, %70, %cst_29 {dimension_numbers = #tpu.dot_dimension_numbers<[1], [0], [0], [1], [0, 0, 1, 1], [], []>} : vector<4x4xbf16>, vector<4x256xbf16>, vector<4x256xf32> -> vector<4x256xf32>
    %74 = arith.addf %67, %73 : vector<4x256xf32>
    %75 = vector.extract_strided_slice %33 {offsets = [0, 143], sizes = [4, 256], strides = [1, 1]} : vector<4x512xbf16> to vector<4x256xbf16>
    %76 = vector.broadcast %3 : vector<1x256xbf16> to vector<4x256xbf16>
    %77 = arith.mulf %75, %76 : vector<4x256xbf16>
    %78 = vector.extract_strided_slice %28 {offsets = [6, 0, 0], sizes = [1, 4, 4], strides = [1, 1, 1]} : vector<9x4x4xbf16> to vector<1x4x4xbf16>
    %79 = vector.shape_cast %78 : vector<1x4x4xbf16> to vector<4x4xbf16>
    %cst_30 = arith.constant dense<0.000000e+00> : vector<4x256xf32>
    %80 = tpu.matmul %79, %77, %cst_30 {dimension_numbers = #tpu.dot_dimension_numbers<[1], [0], [0], [1], [0, 0, 1, 1], [], []>} : vector<4x4xbf16>, vector<4x256xbf16>, vector<4x256xf32> -> vector<4x256xf32>
    %81 = arith.addf %74, %80 : vector<4x256xf32>
    %82 = vector.extract_strided_slice %33 {offsets = [0, 144], sizes = [4, 256], strides = [1, 1]} : vector<4x512xbf16> to vector<4x256xbf16>
    %83 = vector.extract_strided_slice %28 {offsets = [7, 0, 0], sizes = [1, 4, 4], strides = [1, 1, 1]} : vector<9x4x4xbf16> to vector<1x4x4xbf16>
    %84 = vector.shape_cast %83 : vector<1x4x4xbf16> to vector<4x4xbf16>
    %cst_31 = arith.constant dense<0.000000e+00> : vector<4x256xf32>
    %85 = tpu.matmul %84, %82, %cst_31 {dimension_numbers = #tpu.dot_dimension_numbers<[1], [0], [0], [1], [0, 0, 1, 1], [], []>} : vector<4x4xbf16>, vector<4x256xbf16>, vector<4x256xf32> -> vector<4x256xf32>
    %86 = arith.addf %81, %85 : vector<4x256xf32>
    %87 = vector.extract_strided_slice %33 {offsets = [0, 145], sizes = [4, 256], strides = [1, 1]} : vector<4x512xbf16> to vector<4x256xbf16>
    %88 = vector.broadcast %4 : vector<1x256xbf16> to vector<4x256xbf16>
    %89 = arith.mulf %87, %88 : vector<4x256xbf16>
    %90 = vector.extract_strided_slice %28 {offsets = [8, 0, 0], sizes = [1, 4, 4], strides = [1, 1, 1]} : vector<9x4x4xbf16> to vector<1x4x4xbf16>
    %91 = vector.shape_cast %90 : vector<1x4x4xbf16> to vector<4x4xbf16>
    %cst_32 = arith.constant dense<0.000000e+00> : vector<4x256xf32>
    %92 = tpu.matmul %91, %89, %cst_32 {dimension_numbers = #tpu.dot_dimension_numbers<[1], [0], [0], [1], [0, 0, 1, 1], [], []>} : vector<4x4xbf16>, vector<4x256xbf16>, vector<4x256xf32> -> vector<4x256xf32>
    %93 = arith.addf %86, %92 : vector<4x256xf32>
    %94 = arith.negf %93 : vector<4x256xf32>
    %95 = math.exp %94 : vector<4x256xf32>
    %cst_33 = arith.constant 1.000000e+00 : f32
    %96 = vector.broadcast %cst_33 : f32 to vector<4x256xf32>
    %97 = arith.addf %96, %95 : vector<4x256xf32>
    %98 = arith.divf %96, %97 : vector<4x256xf32>
    %99 = arith.mulf %93, %98 : vector<4x256xf32>
    %c0_34 = arith.constant 0 : index
    %c0_35 = arith.constant 0 : index
    %c0_36 = arith.constant 0 : index
    %c0_37 = arith.constant 0 : index
    %100 = vector.load %arg9[%c0_34, %c0_35, %c0_36, %c0_37] : memref<1x9x4x4xbf16, #tpu.memory_space<vmem>>, vector<1x9x4x4xbf16>
    %101 = vector.shape_cast %100 : vector<1x9x4x4xbf16> to vector<9x4x4xbf16>
    %c0_38 = arith.constant 0 : index
    %c0_39 = arith.constant 0 : index
    %c0_40 = arith.constant 0 : index
    %102 = vector.load %arg10[%c0_38, %c0_39, %c0_40] : memref<1x4x1xf32, #tpu.memory_space<vmem>>, vector<1x4x1xf32>
    %103 = vector.shape_cast %102 : vector<1x4x1xf32> to vector<4x1xf32>
    %104 = arith.truncf %99 : vector<4x256xf32> to vector<4x256xbf16>
    %cst_41 = arith.constant 0.000000e+00 : bf16
    %105 = vector.broadcast %cst_41 : bf16 to vector<4x128xbf16>
    %106 = tpu.concatenate %105, %104, %105 in 1 : vector<4x128xbf16>, vector<4x256xbf16>, vector<4x128xbf16> -> vector<4x512xbf16>
    %cst_42 = arith.constant 0.000000e+00 : f32
    %107 = vector.broadcast %cst_42 : f32 to vector<4x256xf32>
    %108 = vector.broadcast %103 : vector<4x1xf32> to vector<4x256xf32>
    %109 = arith.addf %107, %108 : vector<4x256xf32>
    %110 = vector.extract_strided_slice %106 {offsets = [0, 111], sizes = [4, 256], strides = [1, 1]} : vector<4x512xbf16> to vector<4x256xbf16>
    %111 = vector.broadcast %3 : vector<1x256xbf16> to vector<4x256xbf16>
    %112 = arith.mulf %110, %111 : vector<4x256xbf16>
    %113 = vector.extract_strided_slice %101 {offsets = [0, 0, 0], sizes = [1, 4, 4], strides = [1, 1, 1]} : vector<9x4x4xbf16> to vector<1x4x4xbf16>
    %114 = vector.shape_cast %113 : vector<1x4x4xbf16> to vector<4x4xbf16>
    %cst_43 = arith.constant dense<0.000000e+00> : vector<4x256xf32>
    %115 = tpu.matmul %114, %112, %cst_43 {dimension_numbers = #tpu.dot_dimension_numbers<[1], [0], [0], [1], [0, 0, 1, 1], [], []>} : vector<4x4xbf16>, vector<4x256xbf16>, vector<4x256xf32> -> vector<4x256xf32>
    %116 = arith.addf %109, %115 : vector<4x256xf32>
    %117 = vector.extract_strided_slice %106 {offsets = [0, 112], sizes = [4, 256], strides = [1, 1]} : vector<4x512xbf16> to vector<4x256xbf16>
    %118 = vector.extract_strided_slice %101 {offsets = [1, 0, 0], sizes = [1, 4, 4], strides = [1, 1, 1]} : vector<9x4x4xbf16> to vector<1x4x4xbf16>
    %119 = vector.shape_cast %118 : vector<1x4x4xbf16> to vector<4x4xbf16>
    %cst_44 = arith.constant dense<0.000000e+00> : vector<4x256xf32>
    %120 = tpu.matmul %119, %117, %cst_44 {dimension_numbers = #tpu.dot_dimension_numbers<[1], [0], [0], [1], [0, 0, 1, 1], [], []>} : vector<4x4xbf16>, vector<4x256xbf16>, vector<4x256xf32> -> vector<4x256xf32>
    %121 = arith.addf %116, %120 : vector<4x256xf32>
    %122 = vector.extract_strided_slice %106 {offsets = [0, 113], sizes = [4, 256], strides = [1, 1]} : vector<4x512xbf16> to vector<4x256xbf16>
    %123 = vector.broadcast %4 : vector<1x256xbf16> to vector<4x256xbf16>
    %124 = arith.mulf %122, %123 : vector<4x256xbf16>
    %125 = vector.extract_strided_slice %101 {offsets = [2, 0, 0], sizes = [1, 4, 4], strides = [1, 1, 1]} : vector<9x4x4xbf16> to vector<1x4x4xbf16>
    %126 = vector.shape_cast %125 : vector<1x4x4xbf16> to vector<4x4xbf16>
    %cst_45 = arith.constant dense<0.000000e+00> : vector<4x256xf32>
    %127 = tpu.matmul %126, %124, %cst_45 {dimension_numbers = #tpu.dot_dimension_numbers<[1], [0], [0], [1], [0, 0, 1, 1], [], []>} : vector<4x4xbf16>, vector<4x256xbf16>, vector<4x256xf32> -> vector<4x256xf32>
    %128 = arith.addf %121, %127 : vector<4x256xf32>
    %129 = vector.extract_strided_slice %106 {offsets = [0, 127], sizes = [4, 256], strides = [1, 1]} : vector<4x512xbf16> to vector<4x256xbf16>
    %130 = vector.broadcast %3 : vector<1x256xbf16> to vector<4x256xbf16>
    %131 = arith.mulf %129, %130 : vector<4x256xbf16>
    %132 = vector.extract_strided_slice %101 {offsets = [3, 0, 0], sizes = [1, 4, 4], strides = [1, 1, 1]} : vector<9x4x4xbf16> to vector<1x4x4xbf16>
    %133 = vector.shape_cast %132 : vector<1x4x4xbf16> to vector<4x4xbf16>
    %cst_46 = arith.constant dense<0.000000e+00> : vector<4x256xf32>
    %134 = tpu.matmul %133, %131, %cst_46 {dimension_numbers = #tpu.dot_dimension_numbers<[1], [0], [0], [1], [0, 0, 1, 1], [], []>} : vector<4x4xbf16>, vector<4x256xbf16>, vector<4x256xf32> -> vector<4x256xf32>
    %135 = arith.addf %128, %134 : vector<4x256xf32>
    %136 = vector.extract_strided_slice %106 {offsets = [0, 128], sizes = [4, 256], strides = [1, 1]} : vector<4x512xbf16> to vector<4x256xbf16>
    %137 = vector.extract_strided_slice %101 {offsets = [4, 0, 0], sizes = [1, 4, 4], strides = [1, 1, 1]} : vector<9x4x4xbf16> to vector<1x4x4xbf16>
    %138 = vector.shape_cast %137 : vector<1x4x4xbf16> to vector<4x4xbf16>
    %cst_47 = arith.constant dense<0.000000e+00> : vector<4x256xf32>
    %139 = tpu.matmul %138, %136, %cst_47 {dimension_numbers = #tpu.dot_dimension_numbers<[1], [0], [0], [1], [0, 0, 1, 1], [], []>} : vector<4x4xbf16>, vector<4x256xbf16>, vector<4x256xf32> -> vector<4x256xf32>
    %140 = arith.addf %135, %139 : vector<4x256xf32>
    %141 = vector.extract_strided_slice %106 {offsets = [0, 129], sizes = [4, 256], strides = [1, 1]} : vector<4x512xbf16> to vector<4x256xbf16>
    %142 = vector.broadcast %4 : vector<1x256xbf16> to vector<4x256xbf16>
    %143 = arith.mulf %141, %142 : vector<4x256xbf16>
    %144 = vector.extract_strided_slice %101 {offsets = [5, 0, 0], sizes = [1, 4, 4], strides = [1, 1, 1]} : vector<9x4x4xbf16> to vector<1x4x4xbf16>
    %145 = vector.shape_cast %144 : vector<1x4x4xbf16> to vector<4x4xbf16>
    %cst_48 = arith.constant dense<0.000000e+00> : vector<4x256xf32>
    %146 = tpu.matmul %145, %143, %cst_48 {dimension_numbers = #tpu.dot_dimension_numbers<[1], [0], [0], [1], [0, 0, 1, 1], [], []>} : vector<4x4xbf16>, vector<4x256xbf16>, vector<4x256xf32> -> vector<4x256xf32>
    %147 = arith.addf %140, %146 : vector<4x256xf32>
    %148 = vector.extract_strided_slice %106 {offsets = [0, 143], sizes = [4, 256], strides = [1, 1]} : vector<4x512xbf16> to vector<4x256xbf16>
    %149 = vector.broadcast %3 : vector<1x256xbf16> to vector<4x256xbf16>
    %150 = arith.mulf %148, %149 : vector<4x256xbf16>
    %151 = vector.extract_strided_slice %101 {offsets = [6, 0, 0], sizes = [1, 4, 4], strides = [1, 1, 1]} : vector<9x4x4xbf16> to vector<1x4x4xbf16>
    %152 = vector.shape_cast %151 : vector<1x4x4xbf16> to vector<4x4xbf16>
    %cst_49 = arith.constant dense<0.000000e+00> : vector<4x256xf32>
    %153 = tpu.matmul %152, %150, %cst_49 {dimension_numbers = #tpu.dot_dimension_numbers<[1], [0], [0], [1], [0, 0, 1, 1], [], []>} : vector<4x4xbf16>, vector<4x256xbf16>, vector<4x256xf32> -> vector<4x256xf32>
    %154 = arith.addf %147, %153 : vector<4x256xf32>
    %155 = vector.extract_strided_slice %106 {offsets = [0, 144], sizes = [4, 256], strides = [1, 1]} : vector<4x512xbf16> to vector<4x256xbf16>
    %156 = vector.extract_strided_slice %101 {offsets = [7, 0, 0], sizes = [1, 4, 4], strides = [1, 1, 1]} : vector<9x4x4xbf16> to vector<1x4x4xbf16>
    %157 = vector.shape_cast %156 : vector<1x4x4xbf16> to vector<4x4xbf16>
    %cst_50 = arith.constant dense<0.000000e+00> : vector<4x256xf32>
    %158 = tpu.matmul %157, %155, %cst_50 {dimension_numbers = #tpu.dot_dimension_numbers<[1], [0], [0], [1], [0, 0, 1, 1], [], []>} : vector<4x4xbf16>, vector<4x256xbf16>, vector<4x256xf32> -> vector<4x256xf32>
    %159 = arith.addf %154, %158 : vector<4x256xf32>
    %160 = vector.extract_strided_slice %106 {offsets = [0, 145], sizes = [4, 256], strides = [1, 1]} : vector<4x512xbf16> to vector<4x256xbf16>
    %161 = vector.broadcast %4 : vector<1x256xbf16> to vector<4x256xbf16>
    %162 = arith.mulf %160, %161 : vector<4x256xbf16>
    %163 = vector.extract_strided_slice %101 {offsets = [8, 0, 0], sizes = [1, 4, 4], strides = [1, 1, 1]} : vector<9x4x4xbf16> to vector<1x4x4xbf16>
    %164 = vector.shape_cast %163 : vector<1x4x4xbf16> to vector<4x4xbf16>
    %cst_51 = arith.constant dense<0.000000e+00> : vector<4x256xf32>
    %165 = tpu.matmul %164, %162, %cst_51 {dimension_numbers = #tpu.dot_dimension_numbers<[1], [0], [0], [1], [0, 0, 1, 1], [], []>} : vector<4x4xbf16>, vector<4x256xbf16>, vector<4x256xf32> -> vector<4x256xf32>
    %166 = arith.addf %159, %165 : vector<4x256xf32>
    %167 = arith.negf %166 : vector<4x256xf32>
    %168 = math.exp %167 : vector<4x256xf32>
    %cst_52 = arith.constant 1.000000e+00 : f32
    %169 = vector.broadcast %cst_52 : f32 to vector<4x256xf32>
    %170 = arith.addf %169, %168 : vector<4x256xf32>
    %171 = arith.divf %169, %170 : vector<4x256xf32>
    %172 = arith.mulf %166, %171 : vector<4x256xf32>
    %173 = arith.addf %15, %172 : vector<4x256xf32>
    %c0_53 = arith.constant 0 : index
    %c0_54 = arith.constant 0 : index
    %174 = vector.load %arg11[%c0_53, %c0_54] : memref<8x4xbf16, #tpu.memory_space<vmem>>, vector<8x4xbf16>
    %175 = arith.truncf %173 : vector<4x256xf32> to vector<4x256xbf16>
    %cst_55 = arith.constant dense<0.000000e+00> : vector<8x256xf32>
    %176 = tpu.matmul %174, %175, %cst_55 {dimension_numbers = #tpu.dot_dimension_numbers<[1], [0], [0], [1], [0, 0, 1, 1], [], []>} : vector<8x4xbf16>, vector<4x256xbf16>, vector<8x256xf32> -> vector<8x256xf32>
    %c0_56 = arith.constant 0 : index
    %c0_57 = arith.constant 0 : index
    %177 = vector.load %arg12[%c0_56, %c0_57] : memref<8x4xbf16, #tpu.memory_space<vmem>>, vector<8x4xbf16>
    %178 = arith.truncf %26 : vector<4x256xf32> to vector<4x256xbf16>
    %cst_58 = arith.constant dense<0.000000e+00> : vector<8x256xf32>
    %179 = tpu.matmul %177, %178, %cst_58 {dimension_numbers = #tpu.dot_dimension_numbers<[1], [0], [0], [1], [0, 0, 1, 1], [], []>} : vector<8x4xbf16>, vector<4x256xbf16>, vector<8x256xf32> -> vector<8x256xf32>
    %180 = arith.addf %176, %179 : vector<8x256xf32>
    %c0_59 = arith.constant 0 : index
    %c0_60 = arith.constant 0 : index
    %181 = vector.load %arg13[%c0_59, %c0_60] : memref<8x1xf32, #tpu.memory_space<vmem>>, vector<8x1xf32>
    %182 = vector.broadcast %181 : vector<8x1xf32> to vector<8x256xf32>
    %183 = arith.addf %180, %182 : vector<8x256xf32>
    %184 = arith.negf %183 : vector<8x256xf32>
    %185 = math.exp %184 : vector<8x256xf32>
    %cst_61 = arith.constant 1.000000e+00 : f32
    %186 = vector.broadcast %cst_61 : f32 to vector<8x256xf32>
    %187 = arith.addf %186, %185 : vector<8x256xf32>
    %188 = arith.divf %186, %187 : vector<8x256xf32>
    %189 = arith.mulf %183, %188 : vector<8x256xf32>
    %c0_62 = arith.constant 0 : index
    %c0_63 = arith.constant 0 : index
    %c0_64 = arith.constant 0 : index
    %190 = vector.load %arg14[%c0_62, %c0_63, %c0_64] : memref<1x8x256xf32, #tpu.memory_space<vmem>>, vector<1x8x256xf32>
    %191 = vector.shape_cast %190 : vector<1x8x256xf32> to vector<8x256xf32>
    %192 = vector.shape_cast %189 : vector<8x256xf32> to vector<1x8x256xf32>
    tpu.vector_store %arg14[%c0_62, %c0_63, %c0_64], %192 {strides = array<i32>} : memref<1x8x256xf32, #tpu.memory_space<vmem>>, vector<1x8x256xf32>,
    return
  }
  func.func @transform_0(%arg0: i32) -> (i32, i32, i32) {
    %c0_i32 = arith.constant 0 : i32
    %c0_i32_0 = arith.constant 0 : i32
    %c0_i32_1 = arith.constant 0 : i32
    return %arg0, %c0_i32, %c0_i32_0 : i32, i32, i32
  }
  func.func @transform_1(%arg0: i32) -> (i32, i32) {
    %c0_i32 = arith.constant 0 : i32
    %c0_i32_0 = arith.constant 0 : i32
    %c0_i32_1 = arith.constant 0 : i32
    return %c0_i32, %c0_i32_0 : i32, i32
  }
  func.func @transform_2(%arg0: i32) -> (i32, i32) {
    %c0_i32 = arith.constant 0 : i32
    %c0_i32_0 = arith.constant 0 : i32
    %c0_i32_1 = arith.constant 0 : i32
    return %c0_i32, %c0_i32_0 : i32, i32
  }
  func.func @transform_3(%arg0: i32) -> (i32, i32) {
    %c0_i32 = arith.constant 0 : i32
    %c0_i32_0 = arith.constant 0 : i32
    %c0_i32_1 = arith.constant 0 : i32
    return %c0_i32, %c0_i32_0 : i32, i32
  }
  func.func @transform_4(%arg0: i32) -> (i32, i32) {
    %c0_i32 = arith.constant 0 : i32
    %c0_i32_0 = arith.constant 0 : i32
    %c0_i32_1 = arith.constant 0 : i32
    return %c0_i32, %c0_i32_0 : i32, i32
  }
  func.func @transform_5(%arg0: i32) -> (i32, i32) {
    %c0_i32 = arith.constant 0 : i32
    %c0_i32_0 = arith.constant 0 : i32
    %c0_i32_1 = arith.constant 0 : i32
    return %c0_i32, %c0_i32_0 : i32, i32
  }
  func.func @transform_6(%arg0: i32) -> (i32, i32, i32, i32) {
    %c0_i32 = arith.constant 0 : i32
    %c0_i32_0 = arith.constant 0 : i32
    %c0_i32_1 = arith.constant 0 : i32
    %c0_i32_2 = arith.constant 0 : i32
    %c0_i32_3 = arith.constant 0 : i32
    return %c0_i32, %c0_i32_0, %c0_i32_1, %c0_i32_2 : i32, i32, i32, i32
  }
  func.func @transform_7(%arg0: i32) -> (i32, i32, i32) {
    %c0_i32 = arith.constant 0 : i32
    %c0_i32_0 = arith.constant 0 : i32
    %c0_i32_1 = arith.constant 0 : i32
    %c0_i32_2 = arith.constant 0 : i32
    return %c0_i32, %c0_i32_0, %c0_i32_1 : i32, i32, i32
  }
  func.func @transform_8(%arg0: i32) -> (i32, i32, i32, i32) {
    %c0_i32 = arith.constant 0 : i32
    %c0_i32_0 = arith.constant 0 : i32
    %c0_i32_1 = arith.constant 0 : i32
    %c0_i32_2 = arith.constant 0 : i32
    %c0_i32_3 = arith.constant 0 : i32
    return %c0_i32, %c0_i32_0, %c0_i32_1, %c0_i32_2 : i32, i32, i32, i32
  }
  func.func @transform_9(%arg0: i32) -> (i32, i32, i32) {
    %c0_i32 = arith.constant 0 : i32
    %c0_i32_0 = arith.constant 0 : i32
    %c0_i32_1 = arith.constant 0 : i32
    %c0_i32_2 = arith.constant 0 : i32
    return %c0_i32, %c0_i32_0, %c0_i32_1 : i32, i32, i32
  }
  func.func @transform_10(%arg0: i32) -> (i32, i32) {
    %c0_i32 = arith.constant 0 : i32
    %c0_i32_0 = arith.constant 0 : i32
    %c0_i32_1 = arith.constant 0 : i32
    return %c0_i32, %c0_i32_0 : i32, i32
  }
  func.func @transform_11(%arg0: i32) -> (i32, i32) {
    %c0_i32 = arith.constant 0 : i32
    %c0_i32_0 = arith.constant 0 : i32
    %c0_i32_1 = arith.constant 0 : i32
    return %c0_i32, %c0_i32_0 : i32, i32
  }
  func.func @transform_12(%arg0: i32) -> (i32, i32) {
    %c0_i32 = arith.constant 0 : i32
    %c0_i32_0 = arith.constant 0 : i32
    %c0_i32_1 = arith.constant 0 : i32
    return %c0_i32, %c0_i32_0 : i32, i32
  }
  func.func @transform_13(%arg0: i32) -> (i32, i32, i32) {
    %c0_i32 = arith.constant 0 : i32
    %c0_i32_0 = arith.constant 0 : i32
    %c0_i32_1 = arith.constant 0 : i32
    return %arg0, %c0_i32, %c0_i32_0 : i32, i32, i32
  }
}

</mosaic_0001>

<bundles_post_ra>
// kernel: repncsp_forward.1
= control target key start
LH: loop header
LB: loop body
LE: loop exit
PB: predicated region body
PF: predicated region fallthrough
CT: control target
= control target key end

     0   :  { %s4092_s0 = inlined_call_operand.hbm [shape: bf16[2,8,256], index: 0, kind: input, shape index: {}]   ;;  %s4093_s1 = inlined_call_operand.hbm [shape: bf16[2,256], index: 1, kind: input, shape index: {}]   ;;  %s4094_s2 = inlined_call_operand.hbm [shape: bf16[4,8], index: 2, kind: input, shape index: {}]   ;;  %s4095_s3 = inlined_call_operand.hbm [shape: f32[4,1], index: 3, kind: input, shape index: {}]   ;;  %s4096_s4 = inlined_call_operand.hbm [shape: bf16[4,8], index: 4, kind: input, shape index: {}]   ;;  %s4097_s5 = inlined_call_operand.hbm [shape: f32[4,1], index: 5, kind: input, shape index: {}]   ;;  %s4098_s6 = inlined_call_operand.hbm [shape: bf16[1,9,4,4], index: 6, kind: input, shape index: {}]   ;;  %s4099_s7 = inlined_call_operand.hbm [shape: f32[1,4,1], index: 7, kind: input, shape index: {}]   ;;  %s4100_s8 = inlined_call_operand.hbm [shape: bf16[1,9,4,4], index: 8, kind: input, shape index: {}]   ;;  %s4101_s9 = inlined_call_operand.hbm [shape: f32[1,4,1], index: 9, kind: input, shape index: {}]   ;;  %s4102_s10 = inlined_call_operand.hbm [shape: bf16[8,4], index: 10, kind: input, shape index: {}]   ;;  %s4103_s11 = inlined_call_operand.hbm [shape: bf16[8,4], index: 11, kind: input, shape index: {}]   ;;  %s4104_s12 = inlined_call_operand.hbm [shape: f32[8,1], index: 12, kind: input, shape index: {}]   ;;  %s4105_s13 = inlined_call_operand.hbm [shape: f32[2,8,256], index: 13, kind: output, shape index: {}]  }
   0x1   :  { %4115 = sst [smem:[#allocation34_spill]] %s4092_s0 }
   0x2   :  { %4116 = sst [smem:[#allocation35_spill]] %s4093_s1 }
   0x3   :  { %4117 = sst [smem:[#allocation36_spill]] %s4094_s2 }
   0x4   :  { %4118 = sst [smem:[#allocation37_spill]] %s4095_s3 }
   0x5   :  { %4119 = sst [smem:[#allocation38_spill]] %s4105_s13 }
   0x6   :  { %18 = vsyncpa [#allocation3], 0 }
   0x7   :  { %20 = vsyncpa [#allocation3 + $0x1], 0 }
   0x8   :  { %21 = vsyncpa [#allocation6], 0 }
   0x9   :  { %22 = vsyncpa [#allocation9], 0 }
   0xa   :  { %23 = vsyncpa [#allocation12], 0 }
   0xb   :  { %24 = vsyncpa [#allocation15], 0 }
   0xc   :  { %25 = vsyncpa [#allocation18], 0 }
   0xd   :  { %26 = vsyncpa [#allocation21], 0 }
   0xe   :  { %27 = vsyncpa [#allocation4], 0 }
   0xf   :  { %29 = vsyncpa [#allocation4 + $0x1], 0  ;;  %s3320_s25 = smov 0   ;;  %s3322_s26 = smov 0  }
  0x10   :  { %s3324_s27 = smov 0   ;;  %s3326_s28 = smov 0  }
  0x11 LB: > { %s3224_s29 = smov [#allocation5]   ;;  %s3341_s14 = sadd.s32 4294967295, %s3222_s28   ;;  %s3222_s28 = sphi %s3326_s28, %s4158_s28   ;;  %s3218_s27 = sphi %s3324_s27, %s4157_s27   ;;  %s3214_s26 = sphi %s3322_s26, %s4156_s26   ;;  %s3210_s25 = sphi %s3320_s25, %s4155_s25  }
  0x12   : > { %s357_s30 = sshll.u32 %s3224_s29, 4  ;;  %4120 = sst [smem:[#allocation32_spill]] %s3341_s14  ;;  %s3346_s30 = int_to_ptr.vmem [resolvable:$true] %s357_s30 }
  0x13   : > { %p2379_p0 = scmp.ge.s32.totalorder %s3222_s28, 1  ;;  %p4112_p1 = scmp.eq.s32.totalorder %s3341_s14, 0 }
  0x14   : > { %p344_p2 = scmp.lt.s32.totalorder %s3222_s28, 3  ;;  %s3225_s16 = smov [#allocation8]  }
  0x15   : > { %s379_s17 = sshll.u32 %s3225_s16, 4  ;;  %s3226_s18 = smov [#allocation11]   ;;  %s3355_s17 = int_to_ptr.vmem [resolvable:$true] %s379_s17 }
  0x16   : > { %p3348_p3 = pnand %p2379_p0, %p344_p2  ;;  %s401_s19 = sshll.u32 %s3226_s18, 4  ;;  %s3363_s19 = int_to_ptr.vmem [resolvable:$true] %s401_s19 }
  0x17   : > { %s3227_s21 = smov [#allocation14]   ;;  %s4124_s1 = sld [smem:[#allocation35_spill]] }
  0x18   : > { %s4121_s15 = scalar_select %p3348_p3, 1, 0 }
  0x19   : > { %p2595_p5 = pneg %p3348_p3  ;;  %s3365_s22 = sshll.u32 %s3227_s21, 4  ;;  %s426_s22 = int_to_ptr.vmem [resolvable:$true] %s3365_s22 }
  0x1a   : > { %4122 = sst [smem:[#allocation33_spill]] %s4121_s15 }
  0x1b   : > { %p3359_p6 = pnand %p2595_p5, %p4112_p1 }
  0x1d   : > { %s2766_s29 = scalar_lea.hbm %s4124_s1, 32  ;;  %p3375_p8 = pneg %p3359_p6 }
  0x1e   : > { %p2767_p7 = scmp.ne.s32.totalorder %s4124_s1, %s2766_s29  ;;  %p2773_p11 = scmp.lt.u32.totalorder %s2766_s29, %s4124_s1 }
  0x20   : > { %p2769_p9 = pnand %p3375_p8, %p2767_p7 }
  0x22   : > { %p2770_p10 = pneg %p2769_p9 }
  0x24   : > { %p2775_p12 = pnand %p2773_p11, %p2770_p10 }
  0x26   : > { %2778 = shalt.err (!%p2775_p12)
}
  0x27   : > { %s2779_s13 = scalar_lea.vmem %s3346_s30, 32  ;;  %p2787_p5 = scmp.lt.s32.totalorder %s3346_s30, %s3346_s30 }
  0x28   : > { %p2780_p13 = scmp.ne.s32.totalorder %s3346_s30, %s2779_s13  ;;  %p2788_p4 = scmp.lt.s32.totalorder %s2779_s13, %s2779_s13 }
  0x2a   : > { %p2782_p0 = pnand %p2780_p13, %p3375_p8  ;;  %p2789_p7 = por %p2788_p4, %p2787_p5 }
  0x2c   : > { %p2783_p2 = pneg %p2782_p0 }
  0x2e   : > { %p2790_p9 = pnand %p2789_p7, %p2783_p2 }
  0x30   : > { %2793 = shalt.err (!%p2790_p9)
}
  0x31   : > { %2598 = dma.hbm_to_vmem [thread:$0]  (!%p3359_p6), %s4124_s1, 32, %s3346_s30, [#allocation6]  }
  0x32   : > { %s4126_s3 = sld [smem:[#allocation37_spill]] }
  0x38   : > { %s2794_s16 = scalar_lea.hbm %s4126_s3, 64 }
  0x39   : > { %p2795_p10 = scmp.ne.s32.totalorder %s4126_s3, %s2794_s16  ;;  %p2801_p12 = scmp.lt.u32.totalorder %s2794_s16, %s4126_s3 }
  0x3b   : > { %p2797_p4 = pnand %p2795_p10, %p3375_p8 }
  0x3d   : > { %p2798_p11 = pneg %p2797_p4 }
  0x3f   : > { %p2803_p13 = pnand %p2801_p12, %p2798_p11 }
  0x41   : > { %2806 = shalt.err (!%p2803_p13)
}
  0x42   : > { %s2807_s30 = scalar_lea.vmem %s3355_s17, 64  ;;  %p2815_p7 = scmp.lt.s32.totalorder %s3355_s17, %s3355_s17 }
  0x43   : > { %p2808_p0 = scmp.ne.s32.totalorder %s3355_s17, %s2807_s30  ;;  %p2816_p9 = scmp.lt.s32.totalorder %s2807_s30, %s2807_s30 }
  0x45   : > { %p2810_p2 = pnand %p2808_p0, %p3375_p8  ;;  %p2817_p10 = por %p2816_p9, %p2815_p7 }
  0x47   : > { %p2811_p5 = pneg %p2810_p2 }
  0x49   : > { %p2818_p4 = pnand %p2817_p10, %p2811_p5 }
  0x4b   : > { %2821 = shalt.err (!%p2818_p4)
}
  0x4c   : > { %2604 = dma.hbm_to_vmem [thread:$0]  (!%p3359_p6), %s4126_s3, 64, %s3355_s17, [#allocation9]  }
  0x4d   : > { %s2822_s24 = scalar_lea.hbm %s4097_s5, 64 }
  0x4e   : > { %p2823_p11 = scmp.ne.s32.totalorder %s4097_s5, %s2822_s24  ;;  %p2829_p0 = scmp.lt.u32.totalorder %s2822_s24, %s4097_s5 }
  0x50   : > { %p2825_p12 = pnand %p2823_p11, %p3375_p8 }
  0x52   : > { %p2826_p13 = pneg %p2825_p12 }
  0x54   : > { %p2831_p2 = pnand %p2829_p0, %p2826_p13 }
  0x56   : > { %2834 = shalt.err (!%p2831_p2)
}
  0x57   : > { %s2835_s17 = scalar_lea.vmem %s3363_s19, 64  ;;  %p2843_p10 = scmp.lt.s32.totalorder %s3363_s19, %s3363_s19 }
  0x58   : > { %p2836_p5 = scmp.ne.s32.totalorder %s3363_s19, %s2835_s17  ;;  %p2844_p4 = scmp.lt.s32.totalorder %s2835_s17, %s2835_s17 }
  0x5a   : > { %p2838_p7 = pnand %p2836_p5, %p3375_p8  ;;  %p2845_p11 = por %p2844_p4, %p2843_p10 }
  0x5c   : > { %p2839_p9 = pneg %p2838_p7 }
  0x5e   : > { %p2846_p12 = pnand %p2845_p11, %p2839_p9 }
  0x60   : > { %2849 = shalt.err (!%p2846_p12)
}
  0x61   : > { %2610 = dma.hbm_to_vmem [thread:$0]  (!%p3359_p6), %s4097_s5, 64, %s3363_s19, [#allocation12]  }
  0x62   : > { %s3228_s14 = smov [#allocation17]   ;;  %s2850_s29 = scalar_lea.hbm %s4099_s7, 64 }
  0x63   : > { %s449_s15 = sshll.u32 %s3228_s14, 4  ;;  %p2851_p13 = scmp.ne.s32.totalorder %s4099_s7, %s2850_s29  ;;  %s450_s15 = int_to_ptr.vmem [resolvable:$true] %s449_s15 }
  0x64   : > { %p2857_p5 = scmp.lt.u32.totalorder %s2850_s29, %s4099_s7 }
  0x65   : > { %p2853_p0 = pnand %p2851_p13, %p3375_p8 }
  0x67   : > { %p2854_p2 = pneg %p2853_p0 }
  0x69   : > { %p2859_p7 = pnand %p2857_p5, %p2854_p2 }
  0x6b   : > { %2862 = shalt.err (!%p2859_p7)
}
  0x6c   : > { %s2863_s19 = scalar_lea.vmem %s426_s22, 64  ;;  %p2871_p11 = scmp.lt.s32.totalorder %s426_s22, %s426_s22 }
  0x6d   : > { %p2864_p9 = scmp.ne.s32.totalorder %s426_s22, %s2863_s19  ;;  %p2872_p12 = scmp.lt.s32.totalorder %s2863_s19, %s2863_s19 }
  0x6f   : > { %p2866_p10 = pnand %p2864_p9, %p3375_p8  ;;  %p2873_p1 = por %p2872_p12, %p2871_p11 }
  0x71   : > { %p2867_p4 = pneg %p2866_p10 }
  0x73   : > { %p2874_p3 = pnand %p2873_p1, %p2867_p4 }
  0x75   : > { %2877 = shalt.err (!%p2874_p3)
}
  0x76   : > { %2616 = dma.hbm_to_vmem [thread:$0]  (!%p3359_p6), %s4099_s7, 64, %s426_s22, [#allocation15]  }
  0x77   : > { %s2878_s24 = scalar_lea.hbm %s4101_s9, 64 }
  0x78   : > { %p2879_p13 = scmp.ne.s32.totalorder %s4101_s9, %s2878_s24  ;;  %p2885_p3 = scmp.lt.u32.totalorder %s2878_s24, %s4101_s9 }
  0x7a   : > { %p2881_p0 = pnand %p2879_p13, %p3375_p8 }
  0x7c   : > { %p2882_p1 = pneg %p2881_p0 }
  0x7e   : > { %p2887_p2 = pnand %p2885_p3, %p2882_p1 }
  0x80   : > { %2890 = shalt.err (!%p2887_p2)
}
  0x81   : > { %s2891_s17 = scalar_lea.vmem %s450_s15, 64  ;;  %p2899_p10 = scmp.lt.s32.totalorder %s450_s15, %s450_s15 }
  0x82   : > { %p2892_p5 = scmp.ne.s32.totalorder %s450_s15, %s2891_s17  ;;  %p2900_p4 = scmp.lt.s32.totalorder %s2891_s17, %s2891_s17 }
  0x84   : > { %p2894_p7 = pnand %p2892_p5, %p3375_p8  ;;  %p2901_p11 = por %p2900_p4, %p2899_p10 }
  0x86   : > { %p2895_p9 = pneg %p2894_p7 }
  0x88   : > { %p2902_p12 = pnand %p2901_p11, %p2895_p9 }
  0x8a   : > { %2905 = shalt.err (!%p2902_p12)
}
  0x8b   : > { %2622 = dma.hbm_to_vmem [thread:$0]  (!%p3359_p6), %s4101_s9, 64, %s450_s15, [#allocation18]  }
  0x8c   : > { %s3229_s30 = smov [#allocation20]   ;;  %s3230_s14 = smov [#allocation7]  }
  0x8d   : > { %s471_s0 = sshll.u32 %s3229_s30, 4  ;;  %s368_s23 = sshll.u32 %s3230_s14, 4  ;;  %s472_s0 = int_to_ptr.vmem [resolvable:$true] %s471_s0  ;;  %s369_s23 = int_to_ptr.vmem [resolvable:$true] %s368_s23 }
  0x8e   : > { %s2906_s16 = scalar_lea.hbm %s4103_s11, 64 }
  0x8f   : > { %p2907_p13 = scmp.ne.s32.totalorder %s4103_s11, %s2906_s16  ;;  %p2913_p3 = scmp.lt.u32.totalorder %s2906_s16, %s4103_s11 }
  0x91   : > { %p2909_p0 = pnand %p2907_p13, %p3375_p8 }
  0x93   : > { %p2910_p1 = pneg %p2909_p0 }
  0x95   : > { %p2915_p2 = pnand %p2913_p3, %p2910_p1 }
  0x97   : > { %2918 = shalt.err (!%p2915_p2)
}
  0x98   : > { %s2919_s15 = scalar_lea.vmem %s472_s0, 64  ;;  %p2927_p10 = scmp.lt.s32.totalorder %s472_s0, %s472_s0 }
  0x99   : > { %p2920_p5 = scmp.ne.s32.totalorder %s472_s0, %s2919_s15  ;;  %p2928_p4 = scmp.lt.s32.totalorder %s2919_s15, %s2919_s15 }
  0x9b   : > { %p2922_p7 = pnand %p2920_p5, %p3375_p8  ;;  %p2929_p11 = por %p2928_p4, %p2927_p10 }
  0x9d   : > { %p2923_p9 = pneg %p2922_p7 }
  0x9f   : > { %p2930_p12 = pnand %p2929_p11, %p2923_p9 }
  0xa1   : > { %2933 = shalt.err (!%p2930_p12)
}
  0xa2   : > { %2628 = dma.hbm_to_vmem [thread:$0]  (!%p3359_p6), %s4103_s11, 64, %s472_s0, [#allocation21]  }
  0xa3   : > { %s4127_s2 = sld [smem:[#allocation36_spill]] }
  0xa9   : > { %s2934_s29 = scalar_lea.hbm %s4127_s2, 32 }
  0xaa   : > { %p2935_p13 = scmp.ne.s32.totalorder %s4127_s2, %s2934_s29  ;;  %p2941_p3 = scmp.lt.u32.totalorder %s2934_s29, %s4127_s2 }
  0xac   : > { %p2937_p0 = pnand %p2935_p13, %p3375_p8 }
  0xae   : > { %p2938_p1 = pneg %p2937_p0 }
  0xb0   : > { %p2943_p2 = pnand %p2941_p3, %p2938_p1 }
  0xb2   : > { %2946 = shalt.err (!%p2943_p2)
}
  0xb3   : > { %s2947_s22 = scalar_lea.vmem %s369_s23, 32  ;;  %p2955_p10 = scmp.lt.s32.totalorder %s369_s23, %s369_s23 }
  0xb4   : > { %p2948_p5 = scmp.ne.s32.totalorder %s369_s23, %s2947_s22  ;;  %p2956_p4 = scmp.lt.s32.totalorder %s2947_s22, %s2947_s22 }
  0xb6   : > { %p2950_p7 = pnand %p2948_p5, %p3375_p8  ;;  %p2957_p11 = por %p2956_p4, %p2955_p10 }
  0xb8   : > { %p2951_p9 = pneg %p2950_p7 }
  0xba   : > { %p2958_p12 = pnand %p2957_p11, %p2951_p9 }
  0xbc   : > { %2961 = shalt.err (!%p2958_p12)
}
  0xbd   : > { %2601 = dma.hbm_to_vmem [thread:$0]  (!%p3359_p6), %s4127_s2, 32, %s369_s23, [#allocation6]  }
  0xbe   : > { %s3231_s19 = smov [#allocation10]   ;;  %s3232_s14 = smov [#allocation13]  }
  0xbf   : > { %s390_s30 = sshll.u32 %s3231_s19, 4  ;;  %s411_s24 = sshll.u32 %s3232_s14, 4  ;;  %s391_s30 = int_to_ptr.vmem [resolvable:$true] %s390_s30  ;;  %s412_s24 = int_to_ptr.vmem [resolvable:$true] %s411_s24 }
  0xc0   : > { %s2962_s21 = scalar_lea.hbm %s4096_s4, 32 }
  0xc1   : > { %p2963_p13 = scmp.ne.s32.totalorder %s4096_s4, %s2962_s21  ;;  %p2969_p3 = scmp.lt.u32.totalorder %s2962_s21, %s4096_s4 }
  0xc3   : > { %p2965_p0 = pnand %p2963_p13, %p3375_p8 }
  0xc5   : > { %p2966_p1 = pneg %p2965_p0 }
  0xc7   : > { %p2971_p2 = pnand %p2969_p3, %p2966_p1 }
  0xc9   : > { %2974 = shalt.err (!%p2971_p2)
}
  0xca   : > { %s2975_s23 = scalar_lea.vmem %s391_s30, 32  ;;  %p2983_p10 = scmp.lt.s32.totalorder %s391_s30, %s391_s30 }
  0xcb   : > { %p2976_p5 = scmp.ne.s32.totalorder %s391_s30, %s2975_s23  ;;  %p2984_p4 = scmp.lt.s32.totalorder %s2975_s23, %s2975_s23 }
  0xcd   : > { %p2978_p7 = pnand %p2976_p5, %p3375_p8  ;;  %p2985_p11 = por %p2984_p4, %p2983_p10 }
  0xcf   : > { %p2979_p9 = pneg %p2978_p7 }
  0xd1   : > { %p2986_p12 = pnand %p2985_p11, %p2979_p9 }
  0xd3   : > { %2989 = shalt.err (!%p2986_p12)
}
  0xd4   : > { %2607 = dma.hbm_to_vmem [thread:$0]  (!%p3359_p6), %s4096_s4, 32, %s391_s30, [#allocation9]  }
  0xd5   : > { %s2990_s16 = scalar_lea.hbm %s4098_s6, 288 }
  0xd6   : > { %p2991_p13 = scmp.ne.s32.totalorder %s4098_s6, %s2990_s16  ;;  %p2997_p3 = scmp.lt.u32.totalorder %s2990_s16, %s4098_s6 }
  0xd8   : > { %p2993_p0 = pnand %p2991_p13, %p3375_p8 }
  0xda   : > { %p2994_p1 = pneg %p2993_p0 }
  0xdc   : > { %p2999_p2 = pnand %p2997_p3, %p2994_p1 }
  0xde   : > { %3002 = shalt.err (!%p2999_p2)
}
  0xdf   : > { %s3003_s0 = scalar_lea.vmem %s412_s24, 288  ;;  %p3011_p10 = scmp.lt.s32.totalorder %s412_s24, %s412_s24 }
  0xe0   : > { %p3004_p5 = scmp.ne.s32.totalorder %s412_s24, %s3003_s0  ;;  %p3012_p4 = scmp.lt.s32.totalorder %s3003_s0, %s3003_s0 }
  0xe2   : > { %p3006_p7 = pnand %p3004_p5, %p3375_p8  ;;  %p3013_p11 = por %p3012_p4, %p3011_p10 }
  0xe4   : > { %p3007_p9 = pneg %p3006_p7 }
  0xe6   : > { %p3014_p12 = pnand %p3013_p11, %p3007_p9 }
  0xe8   : > { %3017 = shalt.err (!%p3014_p12)
}
  0xe9   : > { %s3233_s30 = smov 32   ;;  %s3234_s23 = smov 2  }
  0xea   : > { %2613 = dma.hbm_to_vmem [thread:$0]  (!%p3359_p6), %s4098_s6, 288, %s412_s24, [#allocation12], %s3233_s30, %s3233_s30, %s3234_s23  }
  0xeb   : > { %s3235_s14 = smov [#allocation16]   ;;  %s3236_s16 = smov [#allocation19]  }
  0xec   : > { %s435_s29 = sshll.u32 %s3235_s14, 4  ;;  %s460_s21 = sshll.u32 %s3236_s16, 4  ;;  %s436_s29 = int_to_ptr.vmem [resolvable:$true] %s435_s29  ;;  %s461_s21 = int_to_ptr.vmem [resolvable:$true] %s460_s21 }
  0xed   : > { %s3018_s22 = scalar_lea.hbm %s4100_s8, 288 }
  0xee   : > { %p3019_p13 = scmp.ne.s32.totalorder %s4100_s8, %s3018_s22  ;;  %p3025_p3 = scmp.lt.u32.totalorder %s3018_s22, %s4100_s8 }
  0xf0   : > { %p3021_p0 = pnand %p3019_p13, %p3375_p8 }
  0xf2   : > { %p3022_p1 = pneg %p3021_p0 }
  0xf4   : > { %p3027_p2 = pnand %p3025_p3, %p3022_p1 }
  0xf6   : > { %3030 = shalt.err (!%p3027_p2)
}
  0xf7   : > { %s3031_s24 = scalar_lea.vmem %s436_s29, 288  ;;  %p3039_p10 = scmp.lt.s32.totalorder %s436_s29, %s436_s29 }
  0xf8   : > { %p3032_p5 = scmp.ne.s32.totalorder %s436_s29, %s3031_s24  ;;  %p3040_p4 = scmp.lt.s32.totalorder %s3031_s24, %s3031_s24 }
  0xfa   : > { %p3034_p7 = pnand %p3032_p5, %p3375_p8  ;;  %p3041_p11 = por %p3040_p4, %p3039_p10 }
  0xfc   : > { %p3035_p9 = pneg %p3034_p7 }
  0xfe   : > { %p3042_p12 = pnand %p3041_p11, %p3035_p9 }
 0x100   : > { %3045 = shalt.err (!%p3042_p12)
}
 0x101   : > { %2619 = dma.hbm_to_vmem [thread:$0]  (!%p3359_p6), %s4100_s8, 288, %s436_s29, [#allocation15], %s3233_s30, %s3233_s30, %s3234_s23  }
 0x102   : > { %s3046_s19 = scalar_lea.hbm %s4102_s10, 64 }
 0x103   : > { %p3047_p13 = scmp.ne.s32.totalorder %s4102_s10, %s3046_s19  ;;  %p3053_p3 = scmp.lt.u32.totalorder %s3046_s19, %s4102_s10 }
 0x105   : > { %p3049_p0 = pnand %p3047_p13, %p3375_p8 }
 0x107   : > { %p3050_p1 = pneg %p3049_p0 }
 0x109   : > { %p3055_p2 = pnand %p3053_p3, %p3050_p1 }
 0x10b   : > { %3058 = shalt.err (!%p3055_p2)
}
 0x10c   : > { %s3059_s22 = scalar_lea.vmem %s461_s21, 64  ;;  %p3067_p10 = scmp.lt.s32.totalorder %s461_s21, %s461_s21 }
 0x10d   : > { %p3060_p5 = scmp.ne.s32.totalorder %s461_s21, %s3059_s22  ;;  %p3068_p4 = scmp.lt.s32.totalorder %s3059_s22, %s3059_s22 }
 0x10f   : > { %p3062_p7 = pnand %p3060_p5, %p3375_p8  ;;  %p3069_p11 = por %p3068_p4, %p3067_p10 }
 0x111   : > { %p3063_p9 = pneg %p3062_p7 }
 0x113   : > { %p3070_p12 = pnand %p3069_p11, %p3063_p9 }
 0x115   : > { %3073 = shalt.err (!%p3070_p12)
}
 0x116   : > { %2625 = dma.hbm_to_vmem [thread:$0]  (!%p3359_p6), %s4102_s10, 64, %s461_s21, [#allocation18]  }
 0x117   : > { %s3237_s29 = smov [#allocation22]   ;;  %s3074_s15 = scalar_lea.hbm %s4104_s12, 128 }
 0x118   : > { %s482_s0 = sshll.u32 %s3237_s29, 4  ;;  %p3075_p13 = scmp.ne.s32.totalorder %s4104_s12, %s3074_s15  ;;  %s483_s0 = int_to_ptr.vmem [resolvable:$true] %s482_s0 }
 0x119   : > { %p3081_p3 = scmp.lt.u32.totalorder %s3074_s15, %s4104_s12 }
 0x11a   : > { %p3077_p0 = pnand %p3075_p13, %p3375_p8 }
 0x11c   : > { %p3078_p1 = pneg %p3077_p0 }
 0x11e   : > { %p3083_p2 = pnand %p3081_p3, %p3078_p1 }
 0x120   : > { %3086 = shalt.err (!%p3083_p2)
}
 0x121   : > { %s3087_s21 = scalar_lea.vmem %s483_s0, 128  ;;  %p3095_p10 = scmp.lt.s32.totalorder %s483_s0, %s483_s0 }
 0x122   : > { %p3088_p5 = scmp.ne.s32.totalorder %s483_s0, %s3087_s21  ;;  %p3096_p4 = scmp.lt.s32.totalorder %s3087_s21, %s3087_s21 }
 0x124   : > { %p3090_p7 = pnand %p3088_p5, %p3375_p8  ;;  %p3097_p11 = por %p3096_p4, %p3095_p10 }
 0x126   : > { %p3091_p9 = pneg %p3090_p7 }
 0x128   : > { %p3098_p12 = pnand %p3097_p11, %p3091_p9 }
 0x12a   : > { %3101 = shalt.err (!%p3098_p12)
}
 0x12b   : > { %s4128_s18 = sld [smem:[#allocation32_spill]]  ;;  %s2378_s17 = sadd.s32 4294967294, %s3222_s28  }
 0x12c   : > { %2631 = dma.hbm_to_vmem [thread:$0]  (!%p3359_p6), %s4104_s12, 128, %s483_s0, [#allocation21]  }
 0x12d   : > { %s3607_s20 = sadd.s32 1, %s3222_s28   ;;  %s42_s30 = sadd.s32 1, %s3218_s27 }
 0x12e   : > { %s39_s22 = ssub.s32 %s3222_s28, %s3607_s20  ;;  %p49_p13 = scmp.ne.s32.totalorder %s3218_s27, %s3214_s26 }
 0x12f   : > { %p40_p8 = scmp.eq.s32.totalorder %s39_s22, 0  ;;  %p50_p0 = scmp.eq.s32.totalorder %s3222_s28, 0 }
 0x130   : > { %p55_p1 = scmp.ne.s32.totalorder %s3214_s26, %s3210_s25  ;;  %p337_p7 = scmp.eq.s32.totalorder %s2378_s17, 1 }
 0x131   : > { %s3618_s23 = scalar_select %p40_p8, %s3218_s27, %s42_s30  }
 0x132   : > { %p3620_p3 = por %p50_p0, %p49_p13  ;;  %p4130_p2 = scmp.eq.s32.totalorder %s4128_s18, 0 }
 0x133   : > { %p331_p5 = scmp.eq.s32.totalorder %s4128_s18, 1  ;;  %p2652_p9 = scmp.lt.s32.totalorder %s3222_s28, 2 }
 0x134   : > { %p3626_p6 = por %p4130_p2, %p55_p1  ;;  %s493_s24 = sand.u32 1, %s3218_s27  }
 0x135   : > { %p3633_p10 = por %p331_p5, %p49_p13  ;;  %p3637_p4 = por %p337_p7, %p55_p1 }
 0x136   : > { %s2393_s2 = sshll.u32 %s493_s24, 3  ;;  %s2473_s3 = sshll.u32 %s3222_s28, 7 }
 0x137   : > { %s4132_s1 = scalar_select %p3633_p10, 1, 0 }
 0x138   : > { %s4133_s15 = scalar_select %p3637_p4, 1, 0 }
 0x139   : > { %s4134_s21 = sld [smem:[#allocation34_spill]]  ;;  %s497_s13 = scalar_lea.vmem [#allocation2], %s2393_s2 }
 0x13a   : > { %s505_s18 = sshll.u32 %s497_s13, 4  ;;  %p3651_p11 = pnand %p2652_p9, %p3620_p3  ;;  %s3647_s18 = int_to_ptr.vmem [resolvable:$true] %s505_s18 }
 0x13b   : > { %s494_s22 = scalar_lea.sflag [#allocation3], %s493_s24 }
 0x13c   : > { %p3104_p8 = pneg %p3651_p11 }
 0x13f   : > { %s3645_s16 = scalar_lea.hbm %s4134_s21, %s2473_s3  ;;  %s3107_s19 = scalar_lea.hbm %s4134_s21, 256 }
 0x140   : > { %s3102_s30 = scalar_lea.hbm %s3645_s16, 128  ;;  %p3108_p1 = scmp.lt.u32.totalorder %s3645_s16, %s4134_s21 }
 0x141   : > { %p3103_p12 = scmp.ne.s32.totalorder %s3645_s16, %s3102_s30  ;;  %p3109_p3 = scmp.lt.u32.totalorder %s3107_s19, %s3102_s30 }
 0x142   : > { %p3111_p5 = scmp.lt.u32.totalorder %s3102_s30, %s3645_s16 }
 0x143   : > { %p3105_p13 = pnand %p3104_p8, %p3103_p12  ;;  %p3110_p2 = por %p3109_p3, %p3108_p1 }
 0x145   : > { %p3106_p0 = pneg %p3105_p13  ;;  %p3112_p7 = por %p3111_p5, %p3110_p2 }
 0x147   : > { %p3113_p9 = pnand %p3112_p7, %p3106_p0 }
 0x149   : > { %3116 = shalt.err (!%p3113_p9)
}
 0x14a   : > { %s3117_s24 = scalar_lea.vmem %s3647_s18, 128  ;;  %s3238_s13 = smov [#allocation2]  }
 0x14b   : > { %p3118_p12 = scmp.ne.s32.totalorder %s3647_s18, %s3117_s24  ;;  %s3122_s2 = sshll.u32 %s3238_s13, 4  ;;  %s3123_s2 = int_to_ptr.vmem [resolvable:$false] %s3122_s2 }
 0x14c   : > { %s3124_s3 = scalar_lea.vmem %s3123_s2, 256  ;;  %p3125_p10 = scmp.lt.s32.totalorder %s3647_s18, %s3123_s2 }
 0x14d   : > { %p3120_p13 = pnand %p3118_p12, %p3104_p8  ;;  %p3126_p1 = scmp.lt.s32.totalorder %s3124_s3, %s3117_s24 }
 0x14f   : > { %p3121_p4 = pneg %p3120_p13  ;;  %p3127_p3 = por %p3126_p1, %p3125_p10 }
 0x151   : > { %p3128_p2 = pnand %p3127_p3, %p3121_p4 }
 0x153   : > { %3131 = shalt.err (!%p3128_p2)
}
 0x154   : > { %2635 = dma.hbm_to_vmem [thread:$0]  (!%p3651_p11), %s3645_s16, 128, %s3647_s18, %s494_s22  }
 0x155   : > { %s4136_s30 = sld [smem:[#allocation33_spill]] }
 0x15b   : > { %p4137_p0 = scmp.ne.s32.totalorder %s4136_s30, 0 }
 0x15c   : > { %s3683_s19 = sand.u32 (!%p4137_p0), 1, %s3214_s26  }
 0x15d   : > { %514 = sbr.rel (%p4137_p0) target bundleno = 1877 (0x755), region = 72  ;;  %s2397_s29 = sshll.u32 (!%p4137_p0), %s3683_s19, 3 }
 0x15e   : > { %s517_s14 = scalar_lea.sflag (!%p4137_p0), [#allocation3], %s3683_s19  ;;  %s520_s24 = scalar_lea.vmem (!%p4137_p0), [#allocation2], %s2397_s29 }
 0x164   : > { %3177 = dma.done.wait (%p3626_p6), %s517_s14, 128  }
 0x165   : > { %3179 = vsyncadd (%p3626_p6), %s517_s14, 4294967168  ;;  %s4138_s17 = sld [smem:[#allocation32_spill]] }
 0x16b   : > { %p4139_p10 = scmp.eq.s32.totalorder %s4138_s17, 0 }
 0x16d   : > { %3181 = dma.done.wait (%p4139_p10), [#allocation6], 64   ;;  %p4140_p4 = pmov %p4139_p10 }
 0x16f   : > { %3183 = vsyncadd (%p4140_p4), [#allocation6], 4294967232  ;;  %p4141_p11 = pmov %p4140_p4 }
 0x170   : > { %p4142_p8 = pmov %p4140_p4 }
 0x171   : > { %3185 = dma.done.wait (%p4141_p11), [#allocation9], 96  }
 0x172   : > { %3187 = vsyncadd (%p4142_p8), [#allocation9], 4294967200  ;;  %p4143_p5 = pmov %p4140_p4 }
 0x173   : > { %p4144_p7 = pmov %p4140_p4 }
 0x174   : > { %3189 = dma.done.wait (%p4143_p5), [#allocation12], 352  }
 0x175   : > { %3191 = vsyncadd (%p4144_p7), [#allocation12], 4294966944  ;;  %p4145_p6 = pmov %p4140_p4 }
 0x176   : > { %p4146_p9 = pmov %p4140_p4 }
 0x177   : > { %3193 = dma.done.wait (%p4145_p6), [#allocation15], 352  }
 0x178   : > { %3195 = vsyncadd (%p4146_p9), [#allocation15], 4294966944  ;;  %p4147_p12 = pmov %p4140_p4 }
 0x179   : > { %p4148_p13 = pmov %p4140_p4 }
 0x17a   : > { %3197 = dma.done.wait (%p4147_p12), [#allocation18], 128  }
 0x17b   : > { %3199 = vsyncadd (%p4148_p13), [#allocation18], 4294967168  ;;  %p4149_p1 = pmov %p4140_p4 }
 0x17d   : > { %3201 = dma.done.wait (%p4149_p1), [#allocation21], 192   ;;  %p4150_p3 = pmov %p4149_p1 }
 0x17e   : > { %v787_v0 = vlaneseq  ;;  %v3239_v1 = vmov 0   ;;  %v3240_v2 = vmov 1966171168   ;;  %v612_v7 = vld [vmem:[%s520_s24] sm:$0xff]  ;;  %vm630_vm0 = vcmask 1043456   ;;  %s3241_s0 = smov 111  }
 0x17f   : > { %3203 = vsyncadd (%p4150_p3), [#allocation21], 4294967104  ;;  %669 = vmatprep.mubr.bf16.mxu0 %v3239_v1  ;;  %2722 = vset.pattern.permute.xlu0 %v3239_v1  ;;  %v785_v3 = vunpack.c.l.s4 %v3240_v2  ;;  %v615_v8 = vld [vmem:[#allocation8] sm:$0xf]  ;;  %v2412_v9 = vcombine.high %v612_v7, %v612_v7  ;;  %v2411_v10 = vcombine.low %v612_v7, %v612_v7  ;;  %v614_v16 = vld [vmem:[#allocation7] sm:$0x3] }
 0x180   : > { %v788_v4 = vshrl.u32 %v787_v0, 7  ;;  %2723 = vset.pattern.permute.xlu1 %v3239_v1  ;;  %734 = vmatprep.mubr.bf16.mxu1 %v3239_v1  ;;  %v2421_v11 = vld.sshfl [vmem:[#allocation5] sm:$0x11 pattern:$0x75316420]  ;;  %vm626_vm1 = vcmask 64512  }
 0x181   : > { %v786_v5 = vunpack.c.0.s8 %v785_v3  ;;  %618 = vperm.xlu0 %2722, %v615_v8   ;;  %v783_v14 = vcombine.high %v2421_v11, %v2421_v11  ;;  %2413 = vmatprep.subr.msk.bf16.mxu0 %vm630_vm0, %v2412_v9  ;;  %v632_v15 = vsel %vm630_vm0, %v2411_v10, 0  ;;  %s3242_s16 = smov 113   ;;  %s3243_s18 = smov 127   ;;  %vm818_vm2 = vcmask 908288  }
 0x182   : > { %v803_v13 = vsub.s32 0, %v788_v4  ;;  %2417 = vmatprep.subr.msk.bf16.mxu1 %vm630_vm0, %v2412_v9  ;;  %638 = vmatpush1.bf16.msra.mxu0 %v632_v15  ;;  %s3244_s22 = smov 1   ;;  %s3245_s13 = smov 17   ;;  %vm976_vm3 = vcmask 924672   ;;  %vm1052_vm4 = vcmask 1039360   ;;  %vm1069_vm5 = vcmask 7168  }
 0x183   : > { %v789_v6 = vsub.s32 %v786_v5, %v788_v4  ;;  %703 = vmatpush1.bf16.msra.mxu1 %v632_v15  ;;  %s3246_s2 = smov 15   ;;  %s3247_s3 = smov 16   ;;  %vm835_vm6 = vcmask 138240   ;;  %vm842_vm7 = vcmask 1041408   ;;  %vm993_vm8 = vcmask 121856  }
 0x184   : > { %v757_v15 = vld [vmem:[#allocation13] sm:$0x3]  ;;  %vm838_vm9 = vcmask 31744   ;;  %vm901_vm10 = vcmask 130048   ;;  %s3248_s30 = smov 112   ;;  %vm1330_vm11 = vcmask 916480  }
 0x185   : > { %v790_v12 = vrot.slane %v2421_v11, %v789_v6  ;;  %v797_v18 = vrot.slane %v783_v14, %v789_v6  ;;  %2414 = vmatmul.mubr.msk.bf16.vlgmr.msra.gmra.mrb[0].mxu0 %vm626_vm1, %v614_v16  ;;  %s2410_s29 = sshll.u32 %s3683_s19, 4  ;;  %s2474_s14 = sshll.u32 %s4138_s17, 8 }
 0x186   : > { %881 = vmatprep.mubr.bf16.mxu0 %v3239_v1  ;;  %s610_s24 = scalar_lea.vmem [#allocation23], %s2410_s29  ;;  %p4152_p0 = scmp.ne.s32.totalorder %s4132_s1, 0 }
 0x187   : > { %v799_v17 = vpack.i.b16 %v790_v12, %v790_v12  ;;  %v956_v19 = vshrl.u32 %v790_v12, 16  ;;  %v806_v21 = vpack.i.b16 %v797_v18, %v797_v18  ;;  %v963_v22 = vshrl.u32 %v797_v18, 16 }
 0x189   : > { %v804_v20 = vrot.slane %v799_v17, %v803_v13  ;;  %v957_v23 = vpack.i.b16 %v956_v19, %v956_v19  ;;  %v811_v24 = vrot.slane %v806_v21, %v803_v13  ;;  %v964_v25 = vpack.i.b16 %v963_v22, %v963_v22 }
 0x18b   : > { %814 = vrot.lane.b32.xlu0 %v804_v20, %s3241_s0  ;;  %816 = vrot.lane.b32.xlu1 %v811_v24, %s3241_s0  ;;  %v3723_v26 = vrot.slane %v964_v25, %v803_v13  ;;  %v3725_v27 = vrot.slane %v957_v23, %v803_v13 }
 0x18f   : > { %974 = vrot.lane.b32.xlu0 %v3723_v26, %s3242_s16  ;;  %972 = vrot.lane.b32.xlu1 %v3725_v27, %s3242_s16 }
 0x193   : > { %1050 = vrot.lane.b32.xlu0 %v811_v24, %s3243_s18  ;;  %1048 = vrot.lane.b32.xlu1 %v804_v20, %s3243_s18 }
 0x197   : > { %1178 = vrot.lane.b32.xlu0 %v3723_v26, %s3244_s22  ;;  %1176 = vrot.lane.b32.xlu1 %v3725_v27, %s3244_s22 }
 0x1fd   : > { %v3740_v46 = vpop.permute.xlu1 %816 }
 0x200   : > { %v619_v28 = vpop.permute.xlu0 %618 }
 0x201   : > { %v973_v53 = vpop.permute.xlu1 %972 }
 0x202   : > { %v981_v54 = vmul.bf16 0, %v973_v53 }
 0x204   : > { %v815_v29 = vpop.permute.xlu0 %814 }
 0x205   : > { %v823_v30 = vmul.bf16 0, %v815_v29  ;;  %v3746_v48 = vsel %vm818_vm2, %v815_v29, %v3740_v46  ;;  %v1049_v60 = vpop.permute.xlu1 %1048  ;;  %v758_v29 = vld [vmem:[#allocation13 + $0x2] sm:$0x3] }
 0x206   : > { %v1057_v62 = vmul.bf16 0, %v1049_v60 }
 0x207   : > { %829 = vrot.lane.b32.xlu1 %v823_v30, %s3245_s13 }
 0x208   : > { %v3768_v55 = vpop.permute.xlu0 %974 }
 0x209   : > { %v3772_v56 = vsel %vm976_vm3, %v973_v53, %v3768_v55  ;;  %v3795_v2 = vpop.permute.xlu1 %1176 }
 0x20c   : > { %v3783_v59 = vpop.permute.xlu0 %1050 }
 0x20d   : > { %v3787_v61 = vsel %vm1052_vm4, %v1049_v60, %v3783_v59 }
 0x210   : > { %v1179_v0 = vpop.permute.xlu0 %1178 }
 0x211   : > { %v3803_v4 = vsel %vm1069_vm5, %v3795_v2, %v1179_v0  ;;  %v1186_v6 = vmul.bf16 0, %v1179_v0 }
 0x258   : > { %v671_v31 = vpop.f32.mrb[0].mxu0 }
 0x259   : > { %v672_v32 = vadd.f32 %v671_v31, %v619_v28  ;;  %v673_v33 = vpop.f32.mrb[1].mxu0 }
 0x25a   : > { %v674_v34 = vadd.f32 %v673_v33, %v619_v28  ;;  %v675_v35 = vpop.f32.mrb[2].mxu0 }
 0x25b   : > { %v2415_v36 = vmul.f32 -1.442695, %v672_v32  ;;  %v676_v37 = vpop.f32.mrb[3].mxu0 }
 0x25c   : > { %v2416_v38 = vmul.f32 -1.442695, %v674_v34 }
 0x25d   : > { %2726 = vpow2.f32 %v2415_v36 }
 0x25e   : > { %2728 = vpow2.f32 %v2416_v38 }
 0x267   : > { %v2727_v39 = vpop.eup %2726 }
 0x268   : > { %v2729_v40 = vpop.eup %2728  ;;  %v684_v41 = vadd.f32 1.0, %v2727_v39 }
 0x269   : > { %v685_v42 = vadd.f32 1.0, %v2729_v40 }
 0x26a   : > { %2730 = vrcp.f32 %v684_v41 }
 0x26b   : > { %2732 = vrcp.f32 %v685_v42  ;;  %v766_v42 = vld [vmem:[#allocation14] sm:$0xf] }
 0x274   : > { %v2731_v43 = vpop.eup %2730 }
 0x275   : > { %v2733_v44 = vpop.eup %2732  ;;  %v3738_v45 = vmul.f32 %v2731_v43, %v672_v32  ;;  %v692_v43 = vld [vmem:[#allocation10] sm:$0x3] }
 0x276   : > { %v3742_v47 = vmul.f32 %v2733_v44, %v674_v34  ;;  %2418 = vmatmul.mubr.msk.bf16.vlgmr.msra.gmra.mrb[0].mxu1 %vm626_vm1, %v692_v43 }
 0x277   : > { %v3750_v49 = vpack.c.bf16 %v3738_v45, %v3738_v45  ;;  %1542 = vmatprep.mubr.bf16.mxu1 %v3239_v1 }
 0x278   : > { %v3754_v50 = vpack.c.bf16 %v3742_v47, %v3742_v47 }
 0x279   : > { %v824_v51 = vmul.bf16 %v3746_v48, %v3750_v49  ;;  %v982_v57 = vmul.bf16 %v3772_v56, %v3750_v49  ;;  %v1058_v63 = vmul.bf16 %v3787_v61, %v3750_v49  ;;  %v1184_v5 = vmul.bf16 %v3795_v2, %v3750_v49  ;;  %v3813_v8 = vpop.permute.xlu1 %829 }
 0x27a   : > { %v825_v52 = vmul.bf16 %v3740_v46, %v3754_v50  ;;  %v983_v58 = vmul.bf16 %v3768_v55, %v3754_v50  ;;  %v1059_v3 = vmul.bf16 %v3783_v59, %v3754_v50  ;;  %v1185_v7 = vmul.bf16 %v3803_v4, %v3754_v50 }
 0x27b   : > { %831 = vrot.lane.b32.xlu0 %v824_v51, %s3245_s13 }
 0x27c   : > { %833 = vrot.lane.b32.xlu1 %v825_v52, %s3245_s13  ;;  %v759_v52 = vld [vmem:[#allocation13 + $0x4] sm:$0x3] }
 0x27f   : > { %1250 = vrot.lane.b32.xlu0 %v804_v20, %s3246_s2 }
 0x280   : > { %1252 = vrot.lane.b32.xlu1 %v811_v24, %s3246_s2 }
 0x283   : > { %895 = vrot.lane.b32.xlu0 %v3239_v1, %s3247_s3 }
 0x284   : > { %897 = vrot.lane.b32.xlu1 %v3750_v49, %s3247_s3 }
 0x287   : > { %899 = vrot.lane.b32.xlu0 %v3754_v50, %s3247_s3 }
 0x288   : > { %987 = vrot.lane.b32.xlu1 %v981_v54, %s3246_s2 }
 0x28b   : > { %989 = vrot.lane.b32.xlu0 %v982_v57, %s3246_s2 }
 0x28c   : > { %991 = vrot.lane.b32.xlu1 %v983_v58, %s3246_s2  ;;  %v760_v58 = vld [vmem:[#allocation13 + $0x6] sm:$0x3] }
 0x28f   : > { %1385 = vrot.lane.b32.xlu0 %v3725_v27, %s3245_s13 }
 0x290   : > { %1387 = vrot.lane.b32.xlu1 %v3723_v26, %s3245_s13 }
 0x293   : > { %1063 = vrot.lane.b32.xlu0 %v1057_v62, %s3244_s22 }
 0x294   : > { %1065 = vrot.lane.b32.xlu1 %v1058_v63, %s3244_s22  ;;  %v1128_v63 = vsel %vm842_vm7, %v3750_v49, 0 }
 0x297   : > { %1067 = vrot.lane.b32.xlu0 %v1059_v3, %s3244_s22  ;;  %v761_v3 = vld [vmem:[#allocation13 + $0x8] sm:$0x3] }
 0x298   : > { %1190 = vrot.lane.b32.xlu1 %v1184_v5, %s3243_s18 }
 0x29b   : > { %1192 = vrot.lane.b32.xlu0 %v1185_v7, %s3243_s18 }
 0x29c   : > { %1194 = vrot.lane.b32.xlu1 %v1186_v6, %s3243_s18  ;;  %v762_v6 = vld [vmem:[#allocation13 + $0xa] sm:$0x3] }
 0x2ed   : > { %v832_v9 = vpop.permute.xlu0 %831 }
 0x2ee   : > { %v836_v10 = vsel %vm835_vm6, %v3813_v8, %v832_v9  ;;  %v834_v11 = vpop.permute.xlu1 %833 }
 0x2ef   : > { %v844_v12 = vsel %vm842_vm7, %v836_v10, 0  ;;  %v837_v13 = vsel %vm835_vm6, %v832_v9, %v834_v11 }
 0x2f0   : > { %2422 = vmatprep.subr.msk.bf16.mxu0 %vm842_vm7, %v837_v13 }
 0x2f1   : > { %850 = vmatpush1.bf16.msra.mxu0 %v844_v12  ;;  %v3820_v14 = vpop.permute.xlu0 %1250 }
 0x2f2   : > { %v1258_v16 = vmul.bf16 %v3820_v14, %v3750_v49  ;;  %v1253_v17 = vpop.permute.xlu1 %1252 }
 0x2f3   : > { %v3826_v18 = vsel %vm993_vm8, %v3820_v14, %v1253_v17  ;;  %v1260_v20 = vmul.bf16 0, %v1253_v17 }
 0x2f4   : > { %v1259_v19 = vmul.bf16 %v3826_v18, %v3754_v50  ;;  %2423 = vmatmul.mubr.msk.bf16.vlgmr.msra.gmra.mrb[4].mxu0 %vm838_vm9, %v757_v15  ;;  %1264 = vrot.lane.b32.xlu0 %v1258_v16, %s3242_s16  ;;  %v763_v15 = vld [vmem:[#allocation13 + $0xc] sm:$0x3] }
 0x2f5   : > { %v3832_v21 = vpop.permute.xlu0 %895  ;;  %945 = vmatprep.mubr.bf16.mxu0 %v3239_v1 }
 0x2f6   : > { %v898_v22 = vpop.permute.xlu1 %897  ;;  %1266 = vrot.lane.b32.xlu1 %v1259_v19, %s3242_s16 }
 0x2f7   : > { %v902_v23 = vsel %vm901_vm10, %v3832_v21, %v898_v22 }
 0x2f8   : > { %1268 = vrot.lane.b32.xlu0 %v1260_v20, %s3242_s16  ;;  %v908_v27 = vsel %vm842_vm7, %v902_v23, 0 }
 0x2f9   : > { %v900_v24 = vpop.permute.xlu0 %899 }
 0x2fa   : > { %v903_v25 = vsel %vm901_vm10, %v898_v22, %v900_v24  ;;  %v3840_v26 = vpop.permute.xlu1 %987  ;;  %1324 = vrot.lane.b32.xlu1 %v3750_v49, %s3248_s30 }
 0x2fb   : > { %2424 = vmatprep.subr.msk.bf16.mxu0 %vm842_vm7, %v903_v25 }
 0x2fc   : > { %1326 = vrot.lane.b32.xlu0 %v3754_v50, %s3248_s30  ;;  %914 = vmatpush1.bf16.msra.mxu0 %v908_v27  ;;  %v764_v27 = vld [vmem:[#allocation13 + $0xe] sm:$0x3] }
 0x2fd   : > { %v990_v28 = vpop.permute.xlu0 %989 }
 0x2fe   : > { %v994_v30 = vsel %vm993_vm8, %v3840_v26, %v990_v28  ;;  %v992_v31 = vpop.permute.xlu1 %991  ;;  %1328 = vrot.lane.b32.xlu1 %v3239_v1, %s3248_s30 }
 0x2ff   : > { %v1000_v32 = vsel %vm842_vm7, %v994_v30, 0  ;;  %v995_v33 = vsel %vm993_vm8, %v990_v28, %v992_v31  ;;  %v765_v31 = vld [vmem:[#allocation13 + $0x10] sm:$0x3] }
 0x300   : > { %2425 = vmatmul.mubr.msk.bf16.vlgmr.msra.gmra.mrb[4].mxu0 %vm838_vm9, %v758_v29  ;;  %2426 = vmatprep.subr.msk.bf16.mxu0 %vm842_vm7, %v995_v33 }
 0x301   : > { %1006 = vmatpush1.bf16.msra.mxu0 %v1000_v32  ;;  %v3856_v34 = vpop.permute.xlu0 %1385  ;;  %1037 = vmatprep.mubr.bf16.mxu0 %v3239_v1 }
 0x302   : > { %v1393_v35 = vmul.bf16 %v3856_v34, %v3750_v49  ;;  %v1388_v36 = vpop.permute.xlu1 %1387 }
 0x303   : > { %v3863_v37 = vsel %vm835_vm6, %v3856_v34, %v1388_v36  ;;  %v1395_v39 = vmul.bf16 0, %v1388_v36 }
 0x304   : > { %v1394_v38 = vmul.bf16 %v3863_v37, %v3754_v50  ;;  %1399 = vrot.lane.b32.xlu0 %v1393_v35, %s3241_s0 }
 0x305   : > { %v3868_v40 = vpop.permute.xlu0 %1063 }
 0x306   : > { %v1066_v41 = vpop.permute.xlu1 %1065  ;;  %1401 = vrot.lane.b32.xlu1 %v1394_v38, %s3241_s0 }
 0x307   : > { %v1070_v44 = vsel %vm1069_vm5, %v3868_v40, %v1066_v41 }
 0x308   : > { %1403 = vrot.lane.b32.xlu0 %v1395_v39, %s3241_s0  ;;  %v1076_v54 = vsel %vm842_vm7, %v1070_v44, 0 }
 0x309   : > { %v1068_v51 = vpop.permute.xlu0 %1067 }
 0x30a   : > { %v1071_v53 = vsel %vm1069_vm5, %v1066_v41, %v1068_v51  ;;  %771 = vperm.xlu1 %2723, %v766_v42   ;;  %v1191_v57 = vpop.permute.xlu1 %1190 }
 0x30b   : > { %2428 = vmatprep.subr.msk.bf16.mxu0 %vm842_vm7, %v1071_v53 }
 0x30c   : > { %2427 = vmatmul.mubr.msk.bf16.vlgmr.msra.gmra.mrb[4].mxu0 %vm838_vm9, %v759_v52 }
 0x30d   : > { %1082 = vmatpush1.bf16.msra.mxu0 %v1076_v54  ;;  %1113 = vmatprep.mubr.bf16.mxu0 %v3239_v1  ;;  %v1193_v60 = vpop.permute.xlu0 %1192 }
 0x30e   : > { %2430 = vmatprep.subr.msk.bf16.mxu0 %vm842_vm7, %v3754_v50  ;;  %v3883_v62 = vpop.permute.xlu1 %1194  ;;  %v1196_v50 = vsel %vm1052_vm4, %v1191_v57, %v1193_v60 }
 0x30f   : > { %v1197_v0 = vsel %vm1052_vm4, %v1193_v60, %v3883_v62  ;;  %v1202_v5 = vsel %vm842_vm7, %v1196_v50, 0 }
 0x318   : > { %2429 = vmatmul.mubr.msk.bf16.vlgmr.msra.gmra.mrb[4].mxu0 %vm838_vm9, %v760_v58 }
 0x319   : > { %1134 = vmatpush1.bf16.msra.mxu0 %v1128_v63  ;;  %1165 = vmatprep.mubr.bf16.mxu0 %v3239_v1 }
 0x31a   : > { %2432 = vmatprep.subr.msk.bf16.mxu0 %vm842_vm7, %v1197_v0 }
 0x324   : > { %2431 = vmatmul.mubr.msk.bf16.vlgmr.msra.gmra.mrb[4].mxu0 %vm838_vm9, %v761_v3 }
 0x325   : > { %1208 = vmatpush1.bf16.msra.mxu0 %v1202_v5  ;;  %1239 = vmatprep.mubr.bf16.mxu0 %v3239_v1 }
 0x330   : > { %2433 = vmatmul.mubr.msk.bf16.vlgmr.msra.gmra.mrb[4].mxu0 %vm838_vm9, %v762_v6 }
 0x331   : > { %1313 = vmatprep.mubr.bf16.mxu0 %v3239_v1 }
 0x366   : > { %v1265_v49 = vpop.permute.xlu0 %1264 }
 0x368   : > { %v1267_v7 = vpop.permute.xlu1 %1266 }
 0x369   : > { %v1270_v9 = vsel %vm976_vm3, %v1265_v49, %v1267_v7  ;;  %v736_v49 = vpop.f32.mrb[0].mxu1 }
 0x36a   : > { %v3899_v10 = vpop.permute.xlu0 %1268  ;;  %v1276_v12 = vsel %vm842_vm7, %v1270_v9, 0  ;;  %v2155_v9 = vld [vmem:[#allocation22] sm:$0xff] }
 0x36b   : > { %v1271_v11 = vsel %vm976_vm3, %v1267_v7, %v3899_v10  ;;  %v738_v7 = vpop.f32.mrb[1].mxu1 }
 0x36c   : > { %v1325_v13 = vpop.permute.xlu1 %1324  ;;  %2434 = vmatprep.subr.msk.bf16.mxu0 %vm842_vm7, %v1271_v11  ;;  %v740_v11 = vpop.f32.mrb[2].mxu1 }
 0x36d   : > { %1282 = vmatpush1.bf16.msra.mxu0 %v1276_v12  ;;  %v741_v12 = vpop.f32.mrb[3].mxu1 }
 0x36e   : > { %v1327_v16 = vpop.permute.xlu0 %1326 }
 0x36f   : > { %v1331_v17 = vsel %vm1330_vm11, %v1325_v13, %v1327_v16 }
 0x370   : > { %v3906_v19 = vpop.permute.xlu1 %1328  ;;  %2435 = vmatmul.mubr.msk.bf16.vlgmr.msra.gmra.mrb[4].mxu0 %vm838_vm9, %v763_v15  ;;  %v1337_v22 = vsel %vm842_vm7, %v1331_v17, 0 }
 0x371   : > { %v1332_v20 = vsel %vm1330_vm11, %v1327_v16, %v3906_v19  ;;  %1374 = vmatprep.mubr.bf16.mxu0 %v3239_v1 }
 0x372   : > { %2436 = vmatprep.subr.msk.bf16.mxu0 %vm842_vm7, %v1332_v20  ;;  %v1473_v20 = vld [vmem:[#allocation16] sm:$0x3] }
 0x373   : > { %1343 = vmatpush1.bf16.msra.mxu0 %v1337_v22 }
 0x376   : > { %v1400_v23 = vpop.permute.xlu0 %1399 }
 0x378   : > { %v1402_v24 = vpop.permute.xlu1 %1401 }
 0x379   : > { %v1405_v25 = vsel %vm818_vm2, %v1400_v23, %v1402_v24 }
 0x37a   : > { %v3915_v28 = vpop.permute.xlu0 %1403  ;;  %v1411_v30 = vsel %vm842_vm7, %v1405_v25, 0 }
 0x37b   : > { %v1406_v29 = vsel %vm818_vm2, %v1402_v24, %v3915_v28 }
 0x37c   : > { %2437 = vmatmul.mubr.msk.bf16.vlgmr.msra.gmra.mrb[4].mxu0 %vm838_vm9, %v764_v27  ;;  %2438 = vmatprep.subr.msk.bf16.mxu0 %vm842_vm7, %v1406_v29 }
 0x37d   : > { %1417 = vmatpush1.bf16.msra.mxu0 %v1411_v30  ;;  %1448 = vmatprep.mubr.bf16.mxu0 %v3239_v1  ;;  %v1474_v30 = vld [vmem:[#allocation16 + $0x2] sm:$0x3] }
 0x388   : > { %2439 = vmatmul.mubr.msk.bf16.vlgmr.msra.gmra.mrb[4].mxu0 %vm838_vm9, %v765_v31 }
 0x389   : > { %2096 = vmatprep.mubr.bf16.mxu0 %v3239_v1  ;;  %v772_v32 = vpop.permute.xlu1 %771 }
 0x45b   : > { %v1450_v33 = vpop.f32.mrb[4].mxu0 }
 0x45c   : > { %v2475_v35 = vadd.f32 %v1450_v33, %v772_v32  ;;  %v1452_v36 = vpop.f32.mrb[5].mxu0 }
 0x45d   : > { %v2476_v38 = vadd.f32 %v1452_v36, %v772_v32  ;;  %v1454_v39 = vpop.f32.mrb[6].mxu0 }
 0x45e   : > { %v2440_v41 = vmul.f32 -1.442695, %v2475_v35  ;;  %v1455_v42 = vpop.f32.mrb[7].mxu0  ;;  %v1475_v39 = vld [vmem:[#allocation16 + $0x4] sm:$0x3] }
 0x45f   : > { %v2441_v43 = vmul.f32 -1.442695, %v2476_v38 }
 0x460   : > { %2734 = vpow2.f32 %v2440_v41 }
 0x461   : > { %2736 = vpow2.f32 %v2441_v43  ;;  %v1476_v43 = vld [vmem:[#allocation16 + $0x6] sm:$0x3] }
 0x46a   : > { %v2735_v44 = vpop.eup %2734 }
 0x46b   : > { %v2737_v51 = vpop.eup %2736  ;;  %v1465_v52 = vadd.f32 1.0, %v2735_v44 }
 0x46c   : > { %v1466_v53 = vadd.f32 1.0, %v2737_v51 }
 0x46d   : > { %2738 = vrcp.f32 %v1465_v52 }
 0x46e   : > { %2740 = vrcp.f32 %v1466_v53 }
 0x477   : > { %v2739_v54 = vpop.eup %2738 }
 0x478   : > { %v2741_v57 = vpop.eup %2740  ;;  %v1471_v58 = vmul.f32 %v2739_v54, %v2475_v35 }
 0x479   : > { %v1472_v60 = vmul.f32 %v2741_v57, %v2476_v38 }
 0x47a   : > { %v3925_v63 = vpack.c.bf16 %v1471_v58, %v1471_v58 }
 0x47b   : > { %v3927_v0 = vpack.c.bf16 %v1472_v60, %v1472_v60 }
 0x47c   : > { %v1491_v50 = vmul.bf16 %v3925_v63, %v3746_v48  ;;  %v1613_v5 = vmul.bf16 %v3925_v63, %v3772_v56  ;;  %v1789_v56 = vmul.bf16 %v3925_v63, %v3795_v2  ;;  %v1971_v2 = vmul.bf16 %v3925_v63, %v3856_v34 }
 0x47d   : > { %v1492_v3 = vmul.bf16 %v3927_v0, %v3740_v46  ;;  %v1614_v6 = vmul.bf16 %v3927_v0, %v3768_v55  ;;  %v1675_v46 = vmul.bf16 %v3925_v63, %v3787_v61  ;;  %v1676_v48 = vmul.bf16 %v3927_v0, %v3783_v59 }
 0x47e   : > { %1495 = vrot.lane.b32.xlu0 %v1491_v50, %s3245_s13  ;;  %v1790_v55 = vmul.bf16 %v3927_v0, %v3803_v4  ;;  %v1851_v61 = vmul.bf16 %v3925_v63, %v3820_v14  ;;  %v1852_v59 = vmul.bf16 %v3927_v0, %v3826_v18  ;;  %v1972_v4 = vmul.bf16 %v3927_v0, %v3863_v37  ;;  %v1482_v14 = vld [vmem:[#allocation17] sm:$0xf]  ;;  %v693_v18 = vld [vmem:[#allocation11] sm:$0xf] }
 0x47f   : > { %1497 = vrot.lane.b32.xlu1 %v1492_v3, %s3245_s13  ;;  %v1477_v50 = vld [vmem:[#allocation16 + $0x8] sm:$0x3] }
 0x482   : > { %1555 = vrot.lane.b32.xlu0 %v3925_v63, %s3247_s3 }
 0x483   : > { %1557 = vrot.lane.b32.xlu1 %v3927_v0, %s3247_s3  ;;  %s3249_s3 = smov [#allocation23]  }
 0x486   : > { %1617 = vrot.lane.b32.xlu0 %v1613_v5, %s3246_s2 }
 0x487   : > { %1619 = vrot.lane.b32.xlu1 %v1614_v6, %s3246_s2  ;;  %s2180_s2 = scalar_lea.sflag [#allocation4], %s3683_s19 }
 0x48a   : > { %1679 = vrot.lane.b32.xlu0 %v1675_v46, %s3244_s22 }
 0x48b   : > { %1681 = vrot.lane.b32.xlu1 %v1676_v48, %s3244_s22  ;;  %s4151_s22 = sld [smem:[#allocation38_spill]] }
 0x48e   : > { %1793 = vrot.lane.b32.xlu0 %v1789_v56, %s3243_s18 }
 0x48f   : > { %1795 = vrot.lane.b32.xlu1 %v1790_v55, %s3243_s18  ;;  %v1478_v55 = vld [vmem:[#allocation16 + $0xa] sm:$0x3] }
 0x491   : > { %s4048_s13 = scalar_lea.hbm %s4151_s22, %s2474_s14 }
 0x492   : > { %1855 = vrot.lane.b32.xlu0 %v1851_v61, %s3242_s16 }
 0x493   : > { %1857 = vrot.lane.b32.xlu1 %v1852_v59, %s3242_s16 }
 0x496   : > { %1913 = vrot.lane.b32.xlu0 %v3925_v63, %s3248_s30 }
 0x497   : > { %1915 = vrot.lane.b32.xlu1 %v3927_v0, %s3248_s30  ;;  %s3136_s30 = sshll.u32 %s3249_s3, 4  ;;  %s3137_s30 = int_to_ptr.vmem [resolvable:$false] %s3136_s30 }
 0x498   : > { %s3138_s29 = scalar_lea.vmem %s3137_s30, 512 }
 0x49a   : > { %1975 = vrot.lane.b32.xlu0 %v1971_v2, %s3241_s0 }
 0x49b   : > { %1977 = vrot.lane.b32.xlu1 %v1972_v4, %s3241_s0  ;;  %s2194_s0 = sshll.u32 %s610_s24, 4  ;;  %s4050_s0 = int_to_ptr.vmem [resolvable:$true] %s2194_s0 }
 0x49c   : > { %s3132_s17 = scalar_lea.vmem %s4050_s0, 256  ;;  %p3139_p11 = scmp.lt.s32.totalorder %s4050_s0, %s3137_s30 }
 0x49d   : > { %p3133_p2 = scmp.ne.s32.totalorder %s4050_s0, %s3132_s17  ;;  %p3140_p8 = scmp.lt.s32.totalorder %s3138_s29, %s3132_s17 }
 0x49e   : > { %1487 = vperm.xlu0 %2722, %v1482_v14  }
 0x49f   : > { %696 = vperm.xlu1 %2723, %v693_v18   ;;  %p3134_p10 = pnand %p3133_p2, %p4152_p0  ;;  %p3141_p5 = por %p3140_p8, %p3139_p11 }
 0x4a1   : > { %p3135_p4 = pneg %p3134_p10 }
 0x4a2   : > { %2158 = vperm.xlu0 %2722, %v2155_v9  }
 0x4a3   : > { %p3142_p7 = pnand %p3141_p5, %p3135_p4 }
 0x4f0   : > { %v1496_v13 = vpop.permute.xlu0 %1495 }
 0x4f1   : > { %v1499_v34 = vsel %vm835_vm6, %v3813_v8, %v1496_v13  ;;  %v1498_v15 = vpop.permute.xlu1 %1497 }
 0x4f2   : > { %v1505_v37 = vsel %vm842_vm7, %v1499_v34, 0  ;;  %v1500_v16 = vsel %vm835_vm6, %v1496_v13, %v1498_v15 }
 0x4f3   : > { %2442 = vmatprep.subr.msk.bf16.mxu1 %vm842_vm7, %v1500_v16 }
 0x4f4   : > { %v1556_v17 = vpop.permute.xlu0 %1555  ;;  %1511 = vmatpush1.bf16.msra.mxu1 %v1505_v37  ;;  %v1480_v37 = vld [vmem:[#allocation16 + $0xe] sm:$0x3] }
 0x4f5   : > { %v1559_v22 = vsel %vm901_vm10, %v3832_v21, %v1556_v17  ;;  %v1558_v23 = vpop.permute.xlu1 %1557 }
 0x4f6   : > { %v1565_v24 = vsel %vm842_vm7, %v1559_v22, 0  ;;  %v1560_v25 = vsel %vm901_vm10, %v1556_v17, %v1558_v23  ;;  %v2052_v17 = vld [vmem:[#allocation20] sm:$0xf] }
 0x4f7   : > { %2443 = vmatmul.mubr.msk.bf16.vlgmr.msra.gmra.mrb[4].mxu1 %vm838_vm9, %v1473_v20  ;;  %2444 = vmatprep.subr.msk.bf16.mxu1 %vm842_vm7, %v1560_v25 }
 0x4f8   : > { %v1618_v8 = vpop.permute.xlu0 %1617  ;;  %1571 = vmatpush1.bf16.msra.mxu1 %v1565_v24  ;;  %1602 = vmatprep.mubr.bf16.mxu1 %v3239_v1 }
 0x4f9   : > { %v1620_v27 = vpop.permute.xlu1 %1619  ;;  %v1621_v21 = vsel %vm993_vm8, %v3840_v26, %v1618_v8 }
 0x4fa   : > { %v1622_v29 = vsel %vm993_vm8, %v1618_v8, %v1620_v27  ;;  %v1627_v33 = vsel %vm842_vm7, %v1621_v21, 0 }
 0x4fb   : > { %2446 = vmatprep.subr.msk.bf16.mxu1 %vm842_vm7, %v1622_v29 }
 0x4fc   : > { %v1680_v31 = vpop.permute.xlu0 %1679 }
 0x4fd   : > { %v1682_v32 = vpop.permute.xlu1 %1681  ;;  %v1683_v38 = vsel %vm1069_vm5, %v3868_v40, %v1680_v31  ;;  %v1741_v40 = vsel %vm842_vm7, %v3925_v63, 0 }
 0x4fe   : > { %v1684_v35 = vsel %vm1069_vm5, %v1680_v31, %v1682_v32  ;;  %v1689_v41 = vsel %vm842_vm7, %v1683_v38, 0 }
 0x500   : > { %v1794_v57 = vpop.permute.xlu0 %1793 }
 0x501   : > { %v1796_v36 = vpop.permute.xlu1 %1795 }
 0x502   : > { %v1798_v51 = vsel %vm1052_vm4, %v1796_v36, %v3883_v62 }
 0x503   : > { %2445 = vmatmul.mubr.msk.bf16.vlgmr.msra.gmra.mrb[4].mxu1 %vm838_vm9, %v1474_v30 }
 0x504   : > { %1633 = vmatpush1.bf16.msra.mxu1 %v1627_v33  ;;  %1664 = vmatprep.mubr.bf16.mxu1 %v3239_v1  ;;  %v1856_v5 = vpop.permute.xlu0 %1855 }
 0x505   : > { %2448 = vmatprep.subr.msk.bf16.mxu1 %vm842_vm7, %v1684_v35  ;;  %v1858_v26 = vpop.permute.xlu1 %1857 }
 0x506   : > { %v1860_v62 = vsel %vm976_vm3, %v1858_v26, %v3899_v10  ;;  %v1859_v56 = vsel %vm976_vm3, %v1856_v5, %v1858_v26 }
 0x507   : > { %v1865_v61 = vsel %vm842_vm7, %v1859_v56, 0 }
 0x508   : > { %v1914_v59 = vpop.permute.xlu0 %1913 }
 0x509   : > { %v1916_v42 = vpop.permute.xlu1 %1915 }
 0x50a   : > { %v1918_v10 = vsel %vm1330_vm11, %v1916_v42, %v3906_v19  ;;  %v1917_v18 = vsel %vm1330_vm11, %v1914_v59, %v1916_v42 }
 0x50b   : > { %v1923_v12 = vsel %vm842_vm7, %v1917_v18, 0 }
 0x50c   : > { %v1976_v34 = vpop.permute.xlu0 %1975 }
 0x50d   : > { %v1978_v44 = vpop.permute.xlu1 %1977 }
 0x50e   : > { %v1980_v13 = vsel %vm818_vm2, %v1978_v44, %v3915_v28  ;;  %v1979_v15 = vsel %vm818_vm2, %v1976_v34, %v1978_v44  ;;  %v1481_v28 = vld [vmem:[#allocation16 + $0x10] sm:$0x3]  ;;  %v2049_v44 = vld [vmem:[#allocation19] sm:$0xf] }
 0x50f   : > { %2447 = vmatmul.mubr.msk.bf16.vlgmr.msra.gmra.mrb[4].mxu1 %vm838_vm9, %v1475_v39  ;;  %v1985_v16 = vsel %vm842_vm7, %v1979_v15, 0 }
 0x510   : > { %1695 = vmatpush1.bf16.msra.mxu1 %v1689_v41  ;;  %1726 = vmatprep.mubr.bf16.mxu1 %v3239_v1 }
 0x511   : > { %2450 = vmatprep.subr.msk.bf16.mxu1 %vm842_vm7, %v3927_v0  ;;  %v1797_v0 = vsel %vm1052_vm4, %v1794_v57, %v1796_v36 }
 0x512   : > { %v1803_v63 = vsel %vm842_vm7, %v1797_v0, 0 }
 0x51b   : > { %2449 = vmatmul.mubr.msk.bf16.vlgmr.msra.gmra.mrb[4].mxu1 %vm838_vm9, %v1476_v43 }
 0x51c   : > { %1747 = vmatpush1.bf16.msra.mxu1 %v1741_v40  ;;  %1778 = vmatprep.mubr.bf16.mxu1 %v3239_v1 }
 0x51d   : > { %2452 = vmatprep.subr.msk.bf16.mxu1 %vm842_vm7, %v1798_v51  ;;  %v1488_v20 = vpop.permute.xlu0 %1487 }
 0x51e   : > { %v697_v52 = vpop.permute.xlu1 %696 }
 0x51f   : > { %v737_v53 = vadd.f32 %v736_v49, %v697_v52  ;;  %v739_v54 = vadd.f32 %v738_v7, %v697_v52  ;;  %v1479_v7 = vld [vmem:[#allocation16 + $0xc] sm:$0x3] }
 0x521   : > { %v2419_v58 = vmul.f32 -1.442695, %v737_v53  ;;  %v2420_v60 = vmul.f32 -1.442695, %v739_v54 }
 0x523   : > { %2742 = vpow2.f32 %v2419_v58 }
 0x524   : > { %2744 = vpow2.f32 %v2420_v60 }
 0x527   : > { %2451 = vmatmul.mubr.msk.bf16.vlgmr.msra.gmra.mrb[4].mxu1 %vm838_vm9, %v1477_v50 }
 0x528   : > { %1809 = vmatpush1.bf16.msra.mxu1 %v1803_v63  ;;  %1840 = vmatprep.mubr.bf16.mxu1 %v3239_v1 }
 0x529   : > { %2454 = vmatprep.subr.msk.bf16.mxu1 %vm842_vm7, %v1860_v62 }
 0x52d   : > { %v2743_v3 = vpop.eup %2742 }
 0x52e   : > { %v2745_v6 = vpop.eup %2744  ;;  %v749_v46 = vadd.f32 1.0, %v2743_v3 }
 0x52f   : > { %v750_v48 = vadd.f32 1.0, %v2745_v6 }
 0x530   : > { %2746 = vrcp.f32 %v749_v46 }
 0x531   : > { %2748 = vrcp.f32 %v750_v48 }
 0x533   : > { %2453 = vmatmul.mubr.msk.bf16.vlgmr.msra.gmra.mrb[4].mxu1 %vm838_vm9, %v1478_v55 }
 0x534   : > { %1871 = vmatpush1.bf16.msra.mxu1 %v1865_v61  ;;  %1902 = vmatprep.mubr.bf16.mxu1 %v3239_v1 }
 0x535   : > { %2456 = vmatprep.subr.msk.bf16.mxu1 %vm842_vm7, %v1918_v10 }
 0x53a   : > { %v2747_v2 = vpop.eup %2746 }
 0x53b   : > { %v2749_v4 = vpop.eup %2748  ;;  %v755_v14 = vmul.f32 %v2747_v2, %v737_v53 }
 0x53c   : > { %v756_v49 = vmul.f32 %v2749_v4, %v739_v54 }
 0x53d   : > { %v2053_v9 = vpack.c.bf16 %v755_v14, %v755_v14 }
 0x53e   : > { %v2054_v11 = vpack.c.bf16 %v756_v49, %v756_v49 }
 0x53f   : > { %2455 = vmatmul.mubr.msk.bf16.vlgmr.msra.gmra.mrb[4].mxu1 %vm838_vm9, %v1479_v7  ;;  %v2059_v19 = vsel %vm842_vm7, %v2053_v9, 0 }
 0x540   : > { %1929 = vmatpush1.bf16.msra.mxu1 %v1923_v12  ;;  %2462 = vmatprep.subr.msk.bf16.mxu0 %vm842_vm7, %v2054_v11 }
 0x541   : > { %2458 = vmatprep.subr.msk.bf16.mxu1 %vm842_vm7, %v1980_v13  ;;  %2065 = vmatpush1.bf16.msra.mxu0 %v2059_v19 }
 0x542   : > { %1960 = vmatprep.mubr.bf16.mxu1 %v3239_v1 }
 0x544   : > { %2463 = vmatmul.mubr.msk.bf16.vlgmr.msra.gmra.mrb[8].mxu0 %vm838_vm9, %v2052_v17 }
 0x54b   : > { %2457 = vmatmul.mubr.msk.bf16.vlgmr.msra.gmra.mrb[4].mxu1 %vm838_vm9, %v1480_v37 }
 0x54c   : > { %1991 = vmatpush1.bf16.msra.mxu1 %v1985_v16  ;;  %2022 = vmatprep.mubr.bf16.mxu1 %v3239_v1 }
 0x557   : > { %2459 = vmatmul.mubr.msk.bf16.vlgmr.msra.gmra.mrb[4].mxu1 %vm838_vm9, %v1481_v28 }
 0x558   : > { %2146 = vmatprep.mubr.bf16.mxu1 %v3239_v1 }
 0x617   : > { %v2098_v40 = vpop.f32.mrb[8].mxu0 }
 0x618   : > { %v2100_v51 = vpop.f32.mrb[9].mxu0 }
 0x619   : > { %v2102_v52 = vpop.f32.mrb[10].mxu0 }
 0x61a   : > { %v2103_v53 = vpop.f32.mrb[11].mxu0 }
 0x62a   : > { %v2024_v22 = vpop.f32.mrb[4].mxu1 }
 0x62b   : > { %v2477_v23 = vadd.f32 %v2024_v22, %v1488_v20  ;;  %v2026_v24 = vpop.f32.mrb[5].mxu1 }
 0x62c   : > { %v2478_v25 = vadd.f32 %v2026_v24, %v1488_v20  ;;  %v2028_v8 = vpop.f32.mrb[6].mxu1 }
 0x62d   : > { %v2460_v27 = vmul.f32 -1.442695, %v2477_v23  ;;  %v2029_v29 = vpop.f32.mrb[7].mxu1 }
 0x62e   : > { %v2461_v21 = vmul.f32 -1.442695, %v2478_v25 }
 0x62f   : > { %2750 = vpow2.f32 %v2460_v27 }
 0x630   : > { %2752 = vpow2.f32 %v2461_v21 }
 0x639   : > { %v2751_v30 = vpop.eup %2750 }
 0x63a   : > { %v2753_v31 = vpop.eup %2752  ;;  %v2039_v32 = vadd.f32 1.0, %v2751_v30 }
 0x63b   : > { %v2040_v33 = vadd.f32 1.0, %v2753_v31 }
 0x63c   : > { %2754 = vrcp.f32 %v2039_v32 }
 0x63d   : > { %2756 = vrcp.f32 %v2040_v33 }
 0x646   : > { %v2755_v1 = vpop.eup %2754 }
 0x647   : > { %v2757_v35 = vpop.eup %2756  ;;  %v2045_v36 = vmul.f32 %v2755_v1, %v2477_v23 }
 0x648   : > { %v2046_v38 = vmul.f32 %v2757_v35, %v2478_v25 }
 0x649   : > { %v2047_v39 = vadd.f32 %v2045_v36, %v3738_v45  ;;  %v2159_v45 = vpop.permute.xlu0 %2158 }
 0x64a   : > { %v2048_v26 = vadd.f32 %v2046_v38, %v3742_v47 }
 0x64b   : > { %v2050_v41 = vpack.c.bf16 %v2047_v39, %v2047_v39 }
 0x64c   : > { %v2051_v42 = vpack.c.bf16 %v2048_v26, %v2048_v26 }
 0x64d   : > { %v2109_v43 = vsel %vm842_vm7, %v2050_v41, 0 }
 0x64e   : > { %2464 = vmatprep.subr.msk.bf16.mxu1 %vm842_vm7, %v2051_v42 }
 0x64f   : > { %2115 = vmatpush1.bf16.msra.mxu1 %v2109_v43 }
 0x652   : > { %2465 = vmatmul.mubr.msk.bf16.vlgmr.msra.gmra.mrb[8].mxu1 %vm838_vm9, %v2049_v44 }
 0x725   : > { %v2148_v54 = vpop.f32.mrb[8].mxu1 }
 0x726   : > { %v2149_v57 = vadd.f32 %v2148_v54, %v2098_v40  ;;  %v2150_v58 = vpop.f32.mrb[9].mxu1 }
 0x727   : > { %v2151_v47 = vadd.f32 %v2150_v58, %v2100_v51  ;;  %v2152_v60 = vpop.f32.mrb[10].mxu1 }
 0x728   : > { %v2161_v0 = vadd.f32 %v2159_v45, %v2149_v57  ;;  %v2153_v50 = vpop.f32.mrb[11].mxu1 }
 0x729   : > { %v2162_v63 = vadd.f32 %v2159_v45, %v2151_v47 }
 0x72a   : > { %v2466_v62 = vmul.f32 -1.442695, %v2161_v0 }
 0x72b   : > { %v2467_v3 = vmul.f32 -1.442695, %v2162_v63 }
 0x72c   : > { %2758 = vpow2.f32 %v2466_v62 }
 0x72d   : > { %2760 = vpow2.f32 %v2467_v3 }
 0x736   : > { %v2759_v5 = vpop.eup %2758 }
 0x737   : > { %v2761_v6 = vpop.eup %2760  ;;  %v2169_v46 = vadd.f32 1.0, %v2759_v5 }
 0x738   : > { %v2170_v48 = vadd.f32 1.0, %v2761_v6 }
 0x739   : > { %2762 = vrcp.f32 %v2169_v46 }
 0x73a   : > { %2764 = vrcp.f32 %v2170_v48 }
 0x743   : > { %v2763_v56 = vpop.eup %2762 }
 0x744   : > { %v2765_v55 = vpop.eup %2764  ;;  %v2175_v61 = vmul.f32 %v2763_v56, %v2161_v0 }
 0x745   : > { %v2176_v10 = vmul.f32 %v2765_v55, %v2162_v63 }
 0x746   : > { %2177 = vst [vmem:[%s610_s24] sm:$0xff] %v2175_v61 }
 0x747   : > { %2178 = vst [vmem:[%s610_s24 + $0x8] sm:$0xff] %v2176_v10 }
 0x748   : > { %3145 = shalt.err (!%p3142_p7)
}
 0x749   : > { %s3146_s19 = scalar_lea.hbm %s4048_s13, 256  ;;  %s3150_s16 = scalar_lea.hbm %s4151_s22, 512 }
 0x74a   : > { %p3147_p6 = scmp.ne.s32.totalorder %s4048_s13, %s3146_s19  ;;  %p3151_p13 = scmp.lt.u32.totalorder %s4048_s13, %s4151_s22 }
 0x74b   : > { %p3152_p1 = scmp.lt.u32.totalorder %s3150_s16, %s3146_s19  ;;  %p3154_p2 = scmp.lt.u32.totalorder %s3146_s19, %s4048_s13 }
 0x74c   : > { %p3148_p9 = pnand %p3147_p6, %p4152_p0 }
 0x74d   : > { %p3153_p3 = por %p3152_p1, %p3151_p13 }
 0x74e   : > { %p3149_p12 = pneg %p3148_p9 }
 0x74f   : > { %p3155_p10 = por %p3154_p2, %p3153_p3 }
 0x751   : > { %p3156_p4 = pnand %p3155_p10, %p3149_p12 }
 0x753   : > { %3159 = shalt.err (!%p3156_p4)
}
 0x754   : > { %2593 = dma.vmem_to_hbm [thread:$0]  (%p4152_p0), %s4050_s0, 256, %s4048_s13, %s2180_s2  }
 0x755 PF: > { %s2206_s17 = sand.u32 1, %s3210_s25   ;;  %p4153_p11 = scmp.ne.s32.totalorder %s4133_s15, 0 }
 0x756   : > { %p4154_p8 = scmp.ge.s32.totalorder %s3222_s28, 2  ;;  %s2207_s30 = scalar_lea.sflag [#allocation4], %s2206_s17 }
 0x758   : > { %p2637_p5 = pnand %p4154_p8, %p4153_p11 }
 0x75a   : > { %3205 = dma.done.wait (!%p2637_p5), %s2207_s30, 256  }
 0x75b   : > { %3207 = vsyncadd (!%p2637_p5), %s2207_s30, 4294967040  ;;  %p32_p7 = scmp.ge.s32.totalorder %s3607_s20, 4   ;;  %s4155_s25 = smov %s3214_s26 }
 0x75c   : > { %s4156_s26 = smov %s3218_s27  ;;  %s4157_s27 = smov %s3618_s23 }
 0x75d   : > { %s4158_s28 = smov %s3607_s20  ;;  %34 = sbr.rel (!%p32_p7) target bundleno = 17 (0x11), region = 165 }
 0x764   :  { %2212 = vsyncpa [#allocation3], 1 }
 0x765   :  { %2214 = vsyncpa [#allocation3 + $0x1], 1 }
 0x766   :  { %2215 = vsyncpa [#allocation6], 1 }
 0x767   :  { %2216 = vsyncpa [#allocation9], 1 }
 0x768   :  { %2217 = vsyncpa [#allocation12], 1 }
 0x769   :  { %2218 = vsyncpa [#allocation15], 1 }
 0x76a   :  { %2219 = vsyncpa [#allocation18], 1 }
 0x76b   :  { %2220 = vsyncpa [#allocation21], 1 }
 0x76c   :  { %2221 = vsyncpa [#allocation4], 1 }
 0x76d   :  { %2223 = vsyncpa [#allocation4 + $0x1], 1 }

</bundles_post_ra>
